<compile_context>
chip_gen: v6e
topology: v6e:2x2x1
jax: 0.10.0
libtpu: 0.0.40
codegen_flags: <defaults>
</compile_context>

<pallas_src>
import functools

import jax
import jax.numpy as jnp
from jax.experimental import pallas as pl
from jax.experimental.pallas import tpu as pltpu


LANE = 128            # K is zero-padded to a multiple of the lane width
TILE_M_ALIGN = 16     # row-tile alignment (also satisfies packed bf16 sublanes)
MAX_BLOCK_M = 512     # ~85% of HBM roofline; could go to 1024 on v5e/v6e
                      # (128 MiB VMEM) but 512 stays safe on v7x (64 MiB VMEM)
VMEM_LIMIT_BYTES = 32 * 1024 * 1024

_COMPILER_PARAMS = pltpu.CompilerParams(
    dimension_semantics=("parallel",),   # row/batch tiles split across v7x's 2 TCs
    vmem_limit_bytes=VMEM_LIMIT_BYTES,
)


# ----------------------------------------------------------------------------
# small helpers
# ----------------------------------------------------------------------------
def _round_up(x, m):
    return (x + m - 1) // m * m


def _pad_axis(x, axis, multiple):
    size = x.shape[axis]
    pad = _round_up(size, multiple) - size
    if pad == 0:
        return x
    widths = [(0, 0)] * x.ndim
    widths[axis] = (0, pad)
    return jnp.pad(x, widths)


def _block_m(m):
    """Row tile: a multiple of 16 (or the full extent), and >=2 tiles whenever
    possible so dimension_semantics=("parallel",) has work for both cores."""
    if m <= TILE_M_ALIGN:
        return m
    return min(MAX_BLOCK_M, _round_up(pl.cdiv(m, 2), TILE_M_ALIGN))


def _batch_tile(b):
    if b < 2 * TILE_M_ALIGN:
        return b
    return min(128, _round_up(pl.cdiv(b, 2), TILE_M_ALIGN))


def _conv_output_hw(h, w):
    oh1, ow1 = (h - 8) // 8 + 1, (w - 8) // 8 + 1     # conv1: k8 s8
    oh2, ow2 = (oh1 - 4) // 2 + 1, (ow1 - 4) // 2 + 1  # conv2: k4 s2
    oh3, ow3 = oh2 - 2, ow2 - 2                         # conv3: k3 s1
    return (oh1, ow1), (oh2, ow2), (oh3, ow3)


# ----------------------------------------------------------------------------
# Pallas kernels
# ----------------------------------------------------------------------------
def _linear_kernel(x_ref, w_ref, b_ref, o_ref, *, relu):
    # bf16 operands on the MXU, f32 accumulate, f32 bias/ReLU epilogue.
    acc = jnp.dot(x_ref[...], w_ref[...], preferred_element_type=jnp.float32)
    acc = acc + b_ref[...]
    if relu:
        acc = jnp.maximum(acc, 0.0)
    o_ref[...] = acc.astype(o_ref.dtype)


def _tail_kernel(x_ref, w3_ref, b3_ref, w1_ref, b1_ref, w2_ref, b2_ref, o_ref,
                 *, kernel, oh, ow):
    """Fused conv3 (3x3 tap accumulation) + flatten + fc1(ReLU) + fc2.

    x_ref : (H2, W2, tb, C)  conv2 activation, batch on the sublane axis
    w3_ref: (K*K, C, C3)     per-tap conv3 weights       b3_ref: (1, C3)
    w1_ref: (OH3*OW3, C3, HID) per-position fc1 weights  b1_ref: (1, HID)
    w2_ref: (HID, NP)                                     b2_ref: (1, NP)
    o_ref : (tb, NP)
    """
    tb = x_ref.shape[2]
    h1 = jnp.zeros((tb, w1_ref.shape[-1]), jnp.float32)   # fc1 pre-activation
    for p in range(oh * ow):
        p_oh, p_ow = p // ow, p % ow
        acc = jnp.zeros((tb, w3_ref.shape[-1]), jnp.float32)
        for t in range(kernel * kernel):
            kh, kw = t // kernel, t % kernel
            acc += jnp.dot(x_ref[p_oh + kh, p_ow + kw], w3_ref[t],
                           preferred_element_type=jnp.float32)
        c3 = jnp.maximum(acc + b3_ref[...], 0.0).astype(jnp.bfloat16)
        h1 = h1 + jnp.dot(c3, w1_ref[p], preferred_element_type=jnp.float32)
    h = jnp.maximum(h1 + b1_ref[...], 0.0).astype(jnp.bfloat16)
    out = jnp.dot(h, w2_ref[...], preferred_element_type=jnp.float32) + b2_ref[...]
    o_ref[...] = out.astype(o_ref.dtype)


# ----------------------------------------------------------------------------
# Pallas wrappers
# ----------------------------------------------------------------------------
def pallas_linear(x, w, b, *, relu, out_dtype=jnp.bfloat16):
    """relu?(x @ W + b).  w: (Kp, N) bf16 (K possibly lane-padded), b: (1, N) f32.
    Grid over row tiles with a ragged last tile (no M pad, no output slice)."""
    m, k = x.shape
    kp, n = w.shape
    x = x.astype(jnp.bfloat16)
    if kp != k:
        # Keep K zero-padding explicit: garbage on the contraction axis would
        # poison valid rows (unlike ragged-M garbage, which is discarded).
        x = _pad_axis(x, 1, LANE)
    tm = _block_m(m)
    return pl.pallas_call(
        functools.partial(_linear_kernel, relu=relu),
        out_shape=jax.ShapeDtypeStruct((m, n), out_dtype),
        grid=(pl.cdiv(m, tm),),
        in_specs=[
            pl.BlockSpec((tm, kp), lambda i: (i, 0)),
            pl.BlockSpec((kp, n), lambda i: (0, 0)),
            pl.BlockSpec((1, n), lambda i: (0, 0)),
        ],
        out_specs=pl.BlockSpec((tm, n), lambda i: (i, 0)),
        compiler_params=_COMPILER_PARAMS,
    )(x, w, b)


def pallas_tail(x_posmajor, w3, b3, w1, b1, w2, b2, *, n_actions):
    """Fused conv3 + flatten + fc1(ReLU) + fc2 over batch tiles.

    x_posmajor: (H2, W2, B, C) conv2 activation (batch on the sublane axis).
    """
    h_in, w_in, bsz, c = x_posmajor.shape
    kernel = 3
    oh3, ow3 = h_in - kernel + 1, w_in - kernel + 1
    npad = w2.shape[1]
    tb = _batch_tile(bsz)
    out = pl.pallas_call(
        functools.partial(_tail_kernel, kernel=kernel, oh=oh3, ow=ow3),
        out_shape=jax.ShapeDtypeStruct((bsz, npad), jnp.float32),
        grid=(pl.cdiv(bsz, tb),),
        in_specs=[
            pl.BlockSpec((h_in, w_in, tb, c), lambda i: (0, 0, i, 0)),
            pl.BlockSpec(w3.shape, lambda i: (0, 0, 0)),
            pl.BlockSpec(b3.shape, lambda i: (0, 0)),
            pl.BlockSpec(w1.shape, lambda i: (0, 0, 0)),
            pl.BlockSpec(b1.shape, lambda i: (0, 0)),
            pl.BlockSpec(w2.shape, lambda i: (0, 0)),
            pl.BlockSpec(b2.shape, lambda i: (0, 0)),
        ],
        out_specs=pl.BlockSpec((tb, npad), lambda i: (i, 0)),
        compiler_params=_COMPILER_PARAMS,
    )(x_posmajor, w3, b3, w1, b1, w2, b2)
    return out[:, :n_actions]          # padded fc2 columns are exactly zero


# ----------------------------------------------------------------------------
# Patch-matrix glue (pure slicing / reshape, no learned compute)
# ----------------------------------------------------------------------------
def conv1_patches_from_nchw(x, *, kernel, stride):
    """stride == kernel: disjoint windows -> a single reshape/transpose straight
    from the NCHW input (folds the NCHW->NHWC conversion in).  H/W are cropped
    to a multiple of the kernel (exact: cropped rows/cols are never read)."""
    bsz, c, h, w = x.shape
    oh, ow = (h - kernel) // stride + 1, (w - kernel) // stride + 1
    x = x[:, :, :oh * kernel, :ow * kernel].astype(jnp.bfloat16)
    x = x.reshape(bsz, c, oh, kernel, ow, kernel)
    x = jnp.transpose(x, (0, 2, 4, 3, 5, 1))      # (B, OH, OW, KH, KW, C)
    return x.reshape(bsz * oh * ow, kernel * kernel * c), oh, ow


def im2col_overlap_posmajor(x, *, kernel, stride):
    """Overlapping windows from an NHWC activation.  Rows ordered (oh, ow, b)
    so the next layer's output reshapes directly into (OH, OW, B, C)."""
    # TODO(synk): fuse this gather into the Pallas conv kernel (tap accumulation).
    bsz, h, w, c = x.shape
    oh = (h - kernel) // stride + 1
    ow = (w - kernel) // stride + 1
    cols = []
    for i in range(kernel):
        for j in range(kernel):
            cols.append(jax.lax.slice(
                x,
                (0, i, j, 0),
                (bsz, i + (oh - 1) * stride + 1, j + (ow - 1) * stride + 1, c),
                (1, stride, stride, 1)))          # (B, OH, OW, C)
    p = jnp.stack(cols, axis=3)                   # (B, OH, OW, K*K, C)
    p = jnp.transpose(p, (1, 2, 0, 3, 4))         # (OH, OW, B, K*K, C)
    return p.reshape(oh * ow * bsz, kernel * kernel * c), oh, ow


# ----------------------------------------------------------------------------
# One-time parameter preparation (PyTorch layout -> padded bf16 matmul operands)
# ----------------------------------------------------------------------------
def prepare_params(params, *, input_hw):
    _, _, (oh3, ow3) = _conv_output_hw(*input_hw)

    def conv_w2d(w):                       # (Cout, Cin, KH, KW) -> (KH*KW*Cin, Cout)
        cout, cin, kh, kw = w.shape
        w2d = jnp.transpose(w, (2, 3, 1, 0)).reshape(kh * kw * cin, cout)
        return _pad_axis(w2d, 0, LANE).astype(jnp.bfloat16)

    def bias_row(vec, n_pad=None):
        if n_pad is not None:
            vec = _pad_axis(vec, 0, n_pad)
        return vec.reshape(1, -1).astype(jnp.float32)

    p = {}
    p["conv1_w"] = conv_w2d(params["conv1_w"])
    p["conv1_b"] = bias_row(params["conv1_b"])
    p["conv2_w"] = conv_w2d(params["conv2_w"])
    p["conv2_b"] = bias_row(params["conv2_b"])

    # conv3 weights as per-tap (Cin, Cout) matrices for the fused tail kernel.
    w3 = params["conv3_w"]                               # (64, 64, 3, 3)
    cout3, cin3, kh3, kw3 = w3.shape
    p["conv3_w"] = (jnp.transpose(w3, (2, 3, 1, 0))
                    .reshape(kh3 * kw3, cin3, cout3).astype(jnp.bfloat16))
    p["conv3_b"] = bias_row(params["conv3_b"])

    # fc1: fold PyTorch's NCHW flatten order into the weight layout:
    # column (c, h, w) of fc1_w -> per-position (h*OW3+w) block of shape (C3, 512).
    w1 = params["fc1_w"]                                 # (512, C3*OH3*OW3)
    hid = w1.shape[0]
    w1 = w1.reshape(hid, cout3, oh3, ow3)
    w1 = jnp.transpose(w1, (2, 3, 1, 0)).reshape(oh3 * ow3, cout3, hid)
    p["fc1_w"] = w1.astype(jnp.bfloat16)
    p["fc1_b"] = bias_row(params["fc1_b"])

    # fc2: pad N to a full lane once (padded columns/bias are zero, sliced off).
    p["fc2_w"] = _pad_axis(params["fc2_w"].T, 1, LANE).astype(jnp.bfloat16)
    p["fc2_b"] = bias_row(params["fc2_b"], n_pad=LANE)
    return p


# ----------------------------------------------------------------------------
# DQN forward
# ----------------------------------------------------------------------------
@functools.partial(jax.jit, static_argnames=("n_actions",))
def dqn_forward(x, prepped, *, n_actions):
    bsz = x.shape[0]

    # conv1 (k8 s8): patch matrix straight from NCHW input, one Pallas matmul.
    cols1, oh1, ow1 = conv1_patches_from_nchw(x, kernel=8, stride=8)
    y1 = pallas_linear(cols1, prepped["conv1_w"], prepped["conv1_b"], relu=True)
    y1 = y1.reshape(bsz, oh1, ow1, y1.shape[-1])          # free reshape (NHWC)

    # conv2 (k4 s2): overlap patches (rows ordered oh,ow,b), one Pallas matmul.
    cols2, oh2, ow2 = im2col_overlap_posmajor(y1, kernel=4, stride=2)
    y2 = pallas_linear(cols2, prepped["conv2_w"], prepped["conv2_b"], relu=True)
    y2 = y2.reshape(oh2, ow2, bsz, y2.shape[-1])          # free reshape

    # fused conv3 + flatten + fc1(ReLU) + fc2 in a single pallas_call.
    return pallas_tail(y2, prepped["conv3_w"], prepped["conv3_b"],
                       prepped["fc1_w"], prepped["fc1_b"],
                       prepped["fc2_w"], prepped["fc2_b"], n_actions=n_actions)


# ----------------------------------------------------------------------------
# Deterministic parameter init (shapes from nn.Module __init__, PyTorch layout)
# ----------------------------------------------------------------------------
def init_params(key, in_channels, n_actions, fc_input_dims):
    ks = jax.random.split(key, 10)
    s = 0.05
    return {
        "conv1_w": s * jax.random.normal(ks[0], (32, in_channels, 8, 8), jnp.float32),
        "conv1_b": s * jax.random.normal(ks[1], (32,), jnp.float32),
        "conv2_w": s * jax.random.normal(ks[2], (64, 32, 4, 4), jnp.float32),
        "conv2_b": s * jax.random.normal(ks[3], (64,), jnp.float32),
        "conv3_w": s * jax.random.normal(ks[4], (64, 64, 3, 3), jnp.float32),
        "conv3_b": s * jax.random.normal(ks[5], (64,), jnp.float32),
        "fc1_w": s * jax.random.normal(ks[6], (512, fc_input_dims), jnp.float32),
        "fc1_b": s * jax.random.normal(ks[7], (512,), jnp.float32),
        "fc2_w": s * jax.random.normal(ks[8], (n_actions, 512), jnp.float32),
        "fc2_b": s * jax.random.normal(ks[9], (n_actions,), jnp.float32),
    }


# ----------------------------------------------------------------------------
# Pure-JAX f32 reference (for correctness check only)
# ----------------------------------------------------------------------------
def dqn_reference(x, params):
    dn = ("NCHW", "OIHW", "NCHW")

    def conv(x, w, b, s):
        y = jax.lax.conv_general_dilated(x, w, (s, s), "VALID", dimension_numbers=dn)
        return jax.nn.relu(y + b.reshape(1, -1, 1, 1))

    x = conv(x, params["conv1_w"], params["conv1_b"], 8)
    x = conv(x, params["conv2_w"], params["conv2_b"], 2)
    x = conv(x, params["conv3_w"], params["conv3_b"], 1)
    flat = x.reshape(x.shape[0], -1)
    h = jax.nn.relu(flat @ params["fc1_w"].T + params["fc1_b"])
    return h @ params["fc2_w"].T + params["fc2_b"]


if __name__ == "__main__":
    # Smallest spatial size the conv stack accepts cleanly:
    # conv1 (k8,s8): 64 -> 8 ; conv2 (k4,s2): 8 -> 3 ; conv3 (k3,s1): 3 -> 1
    B, C, H, W = 2, 4, 64, 64
    n_actions = 6
    fc_input_dims = 64 * 1 * 1

    key = jax.random.PRNGKey(0)
    k_x, k_p = jax.random.split(key)
    x = jax.random.normal(k_x, (B, C, H, W), jnp.float32)
    params = init_params(k_p, C, n_actions, fc_input_dims)
    prepped = prepare_params(params, input_hw=(H, W))

    actions = jax.block_until_ready(dqn_forward(x, prepped, n_actions=n_actions))
    ref = jax.block_until_ready(dqn_reference(x, params))

    assert actions.shape == (B, n_actions)
    err = float(jnp.max(jnp.abs(actions - ref)))
    scale = float(jnp.max(jnp.abs(ref))) + 1e-6
    # bf16 MXU operands -> looser tolerance than the pure-f32 reference path
    assert err / scale < 5e-2, f"mismatch: max abs err {err} vs ref scale {scale}"
    print("KERNEL_OK")
</pallas_src>

<mosaic_0001>
module attributes {stable_mosaic.version = 11 : i64} {
  func.func @_linear_kernel(%arg0: i32, %arg1: memref<64x256xbf16, #tpu.memory_space<vmem>>, %arg2: memref<256x32xbf16, #tpu.memory_space<vmem>>, %arg3: memref<1x32xf32, #tpu.memory_space<vmem>>, %arg4: memref<64x32xbf16, #tpu.memory_space<vmem>>) attributes {dimension_semantics = [#tpu.dimension_semantics<parallel>], iteration_bounds = array<i64: 2>, scalar_prefetch = 0 : i64, scratch_operands = 0 : i64, tpu.core_type = #tpu.core_type<tc>, window_params = [{transform_indices = @transform_0, window_bounds = array<i64: 64, 256>}, {pipeline_mode = #tpu.pipeline_mode<synchronous>, transform_indices = @transform_1, window_bounds = array<i64: 256, 32>}, {pipeline_mode = #tpu.pipeline_mode<synchronous>, transform_indices = @transform_2, window_bounds = array<i64: 1, 32>}, {transform_indices = @transform_3, window_bounds = array<i64: 64, 32>}]} {
    %c0 = arith.constant 0 : index
    %c0_0 = arith.constant 0 : index
    %0 = vector.load %arg1[%c0, %c0_0] : memref<64x256xbf16, #tpu.memory_space<vmem>>, vector<64x256xbf16>
    %c0_1 = arith.constant 0 : index
    %c0_2 = arith.constant 0 : index
    %1 = vector.load %arg2[%c0_1, %c0_2] : memref<256x32xbf16, #tpu.memory_space<vmem>>, vector<256x32xbf16>
    %cst = arith.constant dense<0.000000e+00> : vector<64x32xf32>
    %2 = tpu.matmul %0, %1, %cst {dimension_numbers = #tpu.dot_dimension_numbers<[1], [0], [0], [1], [0, 0, 1, 1], [], []>} : vector<64x256xbf16>, vector<256x32xbf16>, vector<64x32xf32> -> vector<64x32xf32>
    %c0_3 = arith.constant 0 : index
    %c0_4 = arith.constant 0 : index
    %3 = vector.load %arg3[%c0_3, %c0_4] : memref<1x32xf32, #tpu.memory_space<vmem>>, vector<1x32xf32>
    %4 = vector.broadcast %3 : vector<1x32xf32> to vector<64x32xf32>
    %5 = arith.addf %2, %4 : vector<64x32xf32>
    %cst_5 = arith.constant 0.000000e+00 : f32
    %6 = vector.broadcast %cst_5 : f32 to vector<64x32xf32>
    %7 = arith.maximumf %5, %6 : vector<64x32xf32>
    %8 = arith.truncf %7 : vector<64x32xf32> to vector<64x32xbf16>
    %c0_6 = arith.constant 0 : index
    %c0_7 = arith.constant 0 : index
    %9 = vector.load %arg4[%c0_6, %c0_7] : memref<64x32xbf16, #tpu.memory_space<vmem>>, vector<64x32xbf16>
    tpu.vector_store %arg4[%c0_6, %c0_7], %8 {strides = array<i32>} : memref<64x32xbf16, #tpu.memory_space<vmem>>, vector<64x32xbf16>,
    return
  }
  func.func @transform_0(%arg0: i32) -> (i32, i32) {
    %c0_i32 = arith.constant 0 : i32
    %c0_i32_0 = arith.constant 0 : i32
    return %arg0, %c0_i32 : i32, i32
  }
  func.func @transform_1(%arg0: i32) -> (i32, i32) {
    %c0_i32 = arith.constant 0 : i32
    %c0_i32_0 = arith.constant 0 : i32
    %c0_i32_1 = arith.constant 0 : i32
    return %c0_i32, %c0_i32_0 : i32, i32
  }
  func.func @transform_2(%arg0: i32) -> (i32, i32) {
    %c0_i32 = arith.constant 0 : i32
    %c0_i32_0 = arith.constant 0 : i32
    %c0_i32_1 = arith.constant 0 : i32
    return %c0_i32, %c0_i32_0 : i32, i32
  }
  func.func @transform_3(%arg0: i32) -> (i32, i32) {
    %c0_i32 = arith.constant 0 : i32
    %c0_i32_0 = arith.constant 0 : i32
    return %arg0, %c0_i32 : i32, i32
  }
}

module attributes {stable_mosaic.version = 11 : i64} {
  func.func @_linear_kernel(%arg0: i32, %arg1: memref<16x512xbf16, #tpu.memory_space<vmem>>, %arg2: memref<512x64xbf16, #tpu.memory_space<vmem>>, %arg3: memref<1x64xf32, #tpu.memory_space<vmem>>, %arg4: memref<16x64xbf16, #tpu.memory_space<vmem>>) attributes {dimension_semantics = [#tpu.dimension_semantics<parallel>], iteration_bounds = array<i64: 2>, scalar_prefetch = 0 : i64, scratch_operands = 0 : i64, tpu.core_type = #tpu.core_type<tc>, window_params = [{transform_indices = @transform_0, window_bounds = array<i64: 16, 512>}, {pipeline_mode = #tpu.pipeline_mode<synchronous>, transform_indices = @transform_1, window_bounds = array<i64: 512, 64>}, {pipeline_mode = #tpu.pipeline_mode<synchronous>, transform_indices = @transform_2, window_bounds = array<i64: 1, 64>}, {transform_indices = @transform_3, window_bounds = array<i64: 16, 64>}]} {
    %c0 = arith.constant 0 : index
    %c0_0 = arith.constant 0 : index
    %0 = vector.load %arg1[%c0, %c0_0] : memref<16x512xbf16, #tpu.memory_space<vmem>>, vector<16x512xbf16>
    %c0_1 = arith.constant 0 : index
    %c0_2 = arith.constant 0 : index
    %1 = vector.load %arg2[%c0_1, %c0_2] : memref<512x64xbf16, #tpu.memory_space<vmem>>, vector<512x64xbf16>
    %cst = arith.constant dense<0.000000e+00> : vector<16x64xf32>
    %2 = tpu.matmul %0, %1, %cst {dimension_numbers = #tpu.dot_dimension_numbers<[1], [0], [0], [1], [0, 0, 1, 1], [], []>} : vector<16x512xbf16>, vector<512x64xbf16>, vector<16x64xf32> -> vector<16x64xf32>
    %c0_3 = arith.constant 0 : index
    %c0_4 = arith.constant 0 : index
    %3 = vector.load %arg3[%c0_3, %c0_4] : memref<1x64xf32, #tpu.memory_space<vmem>>, vector<1x64xf32>
    %4 = vector.broadcast %3 : vector<1x64xf32> to vector<16x64xf32>
    %5 = arith.addf %2, %4 : vector<16x64xf32>
    %cst_5 = arith.constant 0.000000e+00 : f32
    %6 = vector.broadcast %cst_5 : f32 to vector<16x64xf32>
    %7 = arith.maximumf %5, %6 : vector<16x64xf32>
    %8 = arith.truncf %7 : vector<16x64xf32> to vector<16x64xbf16>
    %c0_6 = arith.constant 0 : index
    %c0_7 = arith.constant 0 : index
    %9 = vector.load %arg4[%c0_6, %c0_7] : memref<16x64xbf16, #tpu.memory_space<vmem>>, vector<16x64xbf16>
    tpu.vector_store %arg4[%c0_6, %c0_7], %8 {strides = array<i32>} : memref<16x64xbf16, #tpu.memory_space<vmem>>, vector<16x64xbf16>,
    return
  }
  func.func @transform_0(%arg0: i32) -> (i32, i32) {
    %c0_i32 = arith.constant 0 : i32
    %c0_i32_0 = arith.constant 0 : i32
    return %arg0, %c0_i32 : i32, i32
  }
  func.func @transform_1(%arg0: i32) -> (i32, i32) {
    %c0_i32 = arith.constant 0 : i32
    %c0_i32_0 = arith.constant 0 : i32
    %c0_i32_1 = arith.constant 0 : i32
    return %c0_i32, %c0_i32_0 : i32, i32
  }
  func.func @transform_2(%arg0: i32) -> (i32, i32) {
    %c0_i32 = arith.constant 0 : i32
    %c0_i32_0 = arith.constant 0 : i32
    %c0_i32_1 = arith.constant 0 : i32
    return %c0_i32, %c0_i32_0 : i32, i32
  }
  func.func @transform_3(%arg0: i32) -> (i32, i32) {
    %c0_i32 = arith.constant 0 : i32
    %c0_i32_0 = arith.constant 0 : i32
    return %arg0, %c0_i32 : i32, i32
  }
}

module attributes {stable_mosaic.version = 11 : i64} {
  func.func @_tail_kernel(%arg0: i32, %arg1: memref<3x3x2x64xbf16, #tpu.memory_space<vmem>>, %arg2: memref<9x64x64xbf16, #tpu.memory_space<vmem>>, %arg3: memref<1x64xf32, #tpu.memory_space<vmem>>, %arg4: memref<1x64x512xbf16, #tpu.memory_space<vmem>>, %arg5: memref<1x512xf32, #tpu.memory_space<vmem>>, %arg6: memref<512x128xbf16, #tpu.memory_space<vmem>>, %arg7: memref<1x128xf32, #tpu.memory_space<vmem>>, %arg8: memref<2x128xf32, #tpu.memory_space<vmem>>) attributes {dimension_semantics = [#tpu.dimension_semantics<parallel>], iteration_bounds = array<i64: 1>, scalar_prefetch = 0 : i64, scratch_operands = 0 : i64, tpu.core_type = #tpu.core_type<tc>, window_params = [{transform_indices = @transform_0, window_bounds = array<i64: 3, 3, 2, 64>}, {pipeline_mode = #tpu.pipeline_mode<synchronous>, transform_indices = @transform_1, window_bounds = array<i64: 9, 64, 64>}, {pipeline_mode = #tpu.pipeline_mode<synchronous>, transform_indices = @transform_2, window_bounds = array<i64: 1, 64>}, {pipeline_mode = #tpu.pipeline_mode<synchronous>, transform_indices = @transform_3, window_bounds = array<i64: 1, 64, 512>}, {pipeline_mode = #tpu.pipeline_mode<synchronous>, transform_indices = @transform_4, window_bounds = array<i64: 1, 512>}, {pipeline_mode = #tpu.pipeline_mode<synchronous>, transform_indices = @transform_5, window_bounds = array<i64: 512, 128>}, {pipeline_mode = #tpu.pipeline_mode<synchronous>, transform_indices = @transform_6, window_bounds = array<i64: 1, 128>}, {transform_indices = @transform_7, window_bounds = array<i64: 2, 128>}]} {
    %cst = arith.constant 0.000000e+00 : f32
    %0 = vector.broadcast %cst : f32 to vector<2x512xf32>
    %cst_0 = arith.constant 0.000000e+00 : f32
    %1 = vector.broadcast %cst_0 : f32 to vector<2x64xf32>
    %c0 = arith.constant 0 : index
    %c0_1 = arith.constant 0 : index
    %c0_2 = arith.constant 0 : index
    %c0_3 = arith.constant 0 : index
    %2 = vector.load %arg1[%c0, %c0_1, %c0_2, %c0_3] : memref<3x3x2x64xbf16, #tpu.memory_space<vmem>>, vector<1x1x2x64xbf16>
    %3 = vector.shape_cast %2 : vector<1x1x2x64xbf16> to vector<2x64xbf16>
    %c0_4 = arith.constant 0 : index
    %c0_5 = arith.constant 0 : index
    %c0_6 = arith.constant 0 : index
    %4 = vector.load %arg2[%c0_4, %c0_5, %c0_6] : memref<9x64x64xbf16, #tpu.memory_space<vmem>>, vector<1x64x64xbf16>
    %5 = vector.shape_cast %4 : vector<1x64x64xbf16> to vector<64x64xbf16>
    %cst_7 = arith.constant dense<0.000000e+00> : vector<2x64xf32>
    %6 = tpu.matmul %3, %5, %cst_7 {dimension_numbers = #tpu.dot_dimension_numbers<[1], [0], [0], [1], [0, 0, 1, 1], [], []>} : vector<2x64xbf16>, vector<64x64xbf16>, vector<2x64xf32> -> vector<2x64xf32>
    %7 = arith.addf %1, %6 : vector<2x64xf32>
    %c0_8 = arith.constant 0 : index
    %c1 = arith.constant 1 : index
    %c0_9 = arith.constant 0 : index
    %c0_10 = arith.constant 0 : index
    %8 = vector.load %arg1[%c0_8, %c1, %c0_9, %c0_10] : memref<3x3x2x64xbf16, #tpu.memory_space<vmem>>, vector<1x1x2x64xbf16>
    %9 = vector.shape_cast %8 : vector<1x1x2x64xbf16> to vector<2x64xbf16>
    %c1_11 = arith.constant 1 : index
    %c0_12 = arith.constant 0 : index
    %c0_13 = arith.constant 0 : index
    %10 = vector.load %arg2[%c1_11, %c0_12, %c0_13] : memref<9x64x64xbf16, #tpu.memory_space<vmem>>, vector<1x64x64xbf16>
    %11 = vector.shape_cast %10 : vector<1x64x64xbf16> to vector<64x64xbf16>
    %cst_14 = arith.constant dense<0.000000e+00> : vector<2x64xf32>
    %12 = tpu.matmul %9, %11, %cst_14 {dimension_numbers = #tpu.dot_dimension_numbers<[1], [0], [0], [1], [0, 0, 1, 1], [], []>} : vector<2x64xbf16>, vector<64x64xbf16>, vector<2x64xf32> -> vector<2x64xf32>
    %13 = arith.addf %7, %12 : vector<2x64xf32>
    %c0_15 = arith.constant 0 : index
    %c2 = arith.constant 2 : index
    %c0_16 = arith.constant 0 : index
    %c0_17 = arith.constant 0 : index
    %14 = vector.load %arg1[%c0_15, %c2, %c0_16, %c0_17] : memref<3x3x2x64xbf16, #tpu.memory_space<vmem>>, vector<1x1x2x64xbf16>
    %15 = vector.shape_cast %14 : vector<1x1x2x64xbf16> to vector<2x64xbf16>
    %c2_18 = arith.constant 2 : index
    %c0_19 = arith.constant 0 : index
    %c0_20 = arith.constant 0 : index
    %16 = vector.load %arg2[%c2_18, %c0_19, %c0_20] : memref<9x64x64xbf16, #tpu.memory_space<vmem>>, vector<1x64x64xbf16>
    %17 = vector.shape_cast %16 : vector<1x64x64xbf16> to vector<64x64xbf16>
    %cst_21 = arith.constant dense<0.000000e+00> : vector<2x64xf32>
    %18 = tpu.matmul %15, %17, %cst_21 {dimension_numbers = #tpu.dot_dimension_numbers<[1], [0], [0], [1], [0, 0, 1, 1], [], []>} : vector<2x64xbf16>, vector<64x64xbf16>, vector<2x64xf32> -> vector<2x64xf32>
    %19 = arith.addf %13, %18 : vector<2x64xf32>
    %c1_22 = arith.constant 1 : index
    %c0_23 = arith.constant 0 : index
    %c0_24 = arith.constant 0 : index
    %c0_25 = arith.constant 0 : index
    %20 = vector.load %arg1[%c1_22, %c0_23, %c0_24, %c0_25] : memref<3x3x2x64xbf16, #tpu.memory_space<vmem>>, vector<1x1x2x64xbf16>
    %21 = vector.shape_cast %20 : vector<1x1x2x64xbf16> to vector<2x64xbf16>
    %c3 = arith.constant 3 : index
    %c0_26 = arith.constant 0 : index
    %c0_27 = arith.constant 0 : index
    %22 = vector.load %arg2[%c3, %c0_26, %c0_27] : memref<9x64x64xbf16, #tpu.memory_space<vmem>>, vector<1x64x64xbf16>
    %23 = vector.shape_cast %22 : vector<1x64x64xbf16> to vector<64x64xbf16>
    %cst_28 = arith.constant dense<0.000000e+00> : vector<2x64xf32>
    %24 = tpu.matmul %21, %23, %cst_28 {dimension_numbers = #tpu.dot_dimension_numbers<[1], [0], [0], [1], [0, 0, 1, 1], [], []>} : vector<2x64xbf16>, vector<64x64xbf16>, vector<2x64xf32> -> vector<2x64xf32>
    %25 = arith.addf %19, %24 : vector<2x64xf32>
    %c1_29 = arith.constant 1 : index
    %c1_30 = arith.constant 1 : index
    %c0_31 = arith.constant 0 : index
    %c0_32 = arith.constant 0 : index
    %26 = vector.load %arg1[%c1_29, %c1_30, %c0_31, %c0_32] : memref<3x3x2x64xbf16, #tpu.memory_space<vmem>>, vector<1x1x2x64xbf16>
    %27 = vector.shape_cast %26 : vector<1x1x2x64xbf16> to vector<2x64xbf16>
    %c4 = arith.constant 4 : index
    %c0_33 = arith.constant 0 : index
    %c0_34 = arith.constant 0 : index
    %28 = vector.load %arg2[%c4, %c0_33, %c0_34] : memref<9x64x64xbf16, #tpu.memory_space<vmem>>, vector<1x64x64xbf16>
    %29 = vector.shape_cast %28 : vector<1x64x64xbf16> to vector<64x64xbf16>
    %cst_35 = arith.constant dense<0.000000e+00> : vector<2x64xf32>
    %30 = tpu.matmul %27, %29, %cst_35 {dimension_numbers = #tpu.dot_dimension_numbers<[1], [0], [0], [1], [0, 0, 1, 1], [], []>} : vector<2x64xbf16>, vector<64x64xbf16>, vector<2x64xf32> -> vector<2x64xf32>
    %31 = arith.addf %25, %30 : vector<2x64xf32>
    %c1_36 = arith.constant 1 : index
    %c2_37 = arith.constant 2 : index
    %c0_38 = arith.constant 0 : index
    %c0_39 = arith.constant 0 : index
    %32 = vector.load %arg1[%c1_36, %c2_37, %c0_38, %c0_39] : memref<3x3x2x64xbf16, #tpu.memory_space<vmem>>, vector<1x1x2x64xbf16>
    %33 = vector.shape_cast %32 : vector<1x1x2x64xbf16> to vector<2x64xbf16>
    %c5 = arith.constant 5 : index
    %c0_40 = arith.constant 0 : index
    %c0_41 = arith.constant 0 : index
    %34 = vector.load %arg2[%c5, %c0_40, %c0_41] : memref<9x64x64xbf16, #tpu.memory_space<vmem>>, vector<1x64x64xbf16>
    %35 = vector.shape_cast %34 : vector<1x64x64xbf16> to vector<64x64xbf16>
    %cst_42 = arith.constant dense<0.000000e+00> : vector<2x64xf32>
    %36 = tpu.matmul %33, %35, %cst_42 {dimension_numbers = #tpu.dot_dimension_numbers<[1], [0], [0], [1], [0, 0, 1, 1], [], []>} : vector<2x64xbf16>, vector<64x64xbf16>, vector<2x64xf32> -> vector<2x64xf32>
    %37 = arith.addf %31, %36 : vector<2x64xf32>
    %c2_43 = arith.constant 2 : index
    %c0_44 = arith.constant 0 : index
    %c0_45 = arith.constant 0 : index
    %c0_46 = arith.constant 0 : index
    %38 = vector.load %arg1[%c2_43, %c0_44, %c0_45, %c0_46] : memref<3x3x2x64xbf16, #tpu.memory_space<vmem>>, vector<1x1x2x64xbf16>
    %39 = vector.shape_cast %38 : vector<1x1x2x64xbf16> to vector<2x64xbf16>
    %c6 = arith.constant 6 : index
    %c0_47 = arith.constant 0 : index
    %c0_48 = arith.constant 0 : index
    %40 = vector.load %arg2[%c6, %c0_47, %c0_48] : memref<9x64x64xbf16, #tpu.memory_space<vmem>>, vector<1x64x64xbf16>
    %41 = vector.shape_cast %40 : vector<1x64x64xbf16> to vector<64x64xbf16>
    %cst_49 = arith.constant dense<0.000000e+00> : vector<2x64xf32>
    %42 = tpu.matmul %39, %41, %cst_49 {dimension_numbers = #tpu.dot_dimension_numbers<[1], [0], [0], [1], [0, 0, 1, 1], [], []>} : vector<2x64xbf16>, vector<64x64xbf16>, vector<2x64xf32> -> vector<2x64xf32>
    %43 = arith.addf %37, %42 : vector<2x64xf32>
    %c2_50 = arith.constant 2 : index
    %c1_51 = arith.constant 1 : index
    %c0_52 = arith.constant 0 : index
    %c0_53 = arith.constant 0 : index
    %44 = vector.load %arg1[%c2_50, %c1_51, %c0_52, %c0_53] : memref<3x3x2x64xbf16, #tpu.memory_space<vmem>>, vector<1x1x2x64xbf16>
    %45 = vector.shape_cast %44 : vector<1x1x2x64xbf16> to vector<2x64xbf16>
    %c7 = arith.constant 7 : index
    %c0_54 = arith.constant 0 : index
    %c0_55 = arith.constant 0 : index
    %46 = vector.load %arg2[%c7, %c0_54, %c0_55] : memref<9x64x64xbf16, #tpu.memory_space<vmem>>, vector<1x64x64xbf16>
    %47 = vector.shape_cast %46 : vector<1x64x64xbf16> to vector<64x64xbf16>
    %cst_56 = arith.constant dense<0.000000e+00> : vector<2x64xf32>
    %48 = tpu.matmul %45, %47, %cst_56 {dimension_numbers = #tpu.dot_dimension_numbers<[1], [0], [0], [1], [0, 0, 1, 1], [], []>} : vector<2x64xbf16>, vector<64x64xbf16>, vector<2x64xf32> -> vector<2x64xf32>
    %49 = arith.addf %43, %48 : vector<2x64xf32>
    %c2_57 = arith.constant 2 : index
    %c2_58 = arith.constant 2 : index
    %c0_59 = arith.constant 0 : index
    %c0_60 = arith.constant 0 : index
    %50 = vector.load %arg1[%c2_57, %c2_58, %c0_59, %c0_60] : memref<3x3x2x64xbf16, #tpu.memory_space<vmem>>, vector<1x1x2x64xbf16>
    %51 = vector.shape_cast %50 : vector<1x1x2x64xbf16> to vector<2x64xbf16>
    %c8 = arith.constant 8 : index
    %c0_61 = arith.constant 0 : index
    %c0_62 = arith.constant 0 : index
    %52 = vector.load %arg2[%c8, %c0_61, %c0_62] : memref<9x64x64xbf16, #tpu.memory_space<vmem>>, vector<1x64x64xbf16>
    %53 = vector.shape_cast %52 : vector<1x64x64xbf16> to vector<64x64xbf16>
    %cst_63 = arith.constant dense<0.000000e+00> : vector<2x64xf32>
    %54 = tpu.matmul %51, %53, %cst_63 {dimension_numbers = #tpu.dot_dimension_numbers<[1], [0], [0], [1], [0, 0, 1, 1], [], []>} : vector<2x64xbf16>, vector<64x64xbf16>, vector<2x64xf32> -> vector<2x64xf32>
    %55 = arith.addf %49, %54 : vector<2x64xf32>
    %c0_64 = arith.constant 0 : index
    %c0_65 = arith.constant 0 : index
    %56 = vector.load %arg3[%c0_64, %c0_65] : memref<1x64xf32, #tpu.memory_space<vmem>>, vector<1x64xf32>
    %57 = vector.broadcast %56 : vector<1x64xf32> to vector<2x64xf32>
    %58 = arith.addf %55, %57 : vector<2x64xf32>
    %cst_66 = arith.constant 0.000000e+00 : f32
    %59 = vector.broadcast %cst_66 : f32 to vector<2x64xf32>
    %60 = arith.maximumf %58, %59 : vector<2x64xf32>
    %61 = arith.truncf %60 : vector<2x64xf32> to vector<2x64xbf16>
    %c0_67 = arith.constant 0 : index
    %c0_68 = arith.constant 0 : index
    %c0_69 = arith.constant 0 : index
    %62 = vector.load %arg4[%c0_67, %c0_68, %c0_69] : memref<1x64x512xbf16, #tpu.memory_space<vmem>>, vector<1x64x512xbf16>
    %63 = vector.shape_cast %62 : vector<1x64x512xbf16> to vector<64x512xbf16>
    %cst_70 = arith.constant dense<0.000000e+00> : vector<2x512xf32>
    %64 = tpu.matmul %61, %63, %cst_70 {dimension_numbers = #tpu.dot_dimension_numbers<[1], [0], [0], [1], [0, 0, 1, 1], [], []>} : vector<2x64xbf16>, vector<64x512xbf16>, vector<2x512xf32> -> vector<2x512xf32>
    %65 = arith.addf %0, %64 : vector<2x512xf32>
    %c0_71 = arith.constant 0 : index
    %c0_72 = arith.constant 0 : index
    %66 = vector.load %arg5[%c0_71, %c0_72] : memref<1x512xf32, #tpu.memory_space<vmem>>, vector<1x512xf32>
    %67 = vector.broadcast %66 : vector<1x512xf32> to vector<2x512xf32>
    %68 = arith.addf %65, %67 : vector<2x512xf32>
    %cst_73 = arith.constant 0.000000e+00 : f32
    %69 = vector.broadcast %cst_73 : f32 to vector<2x512xf32>
    %70 = arith.maximumf %68, %69 : vector<2x512xf32>
    %71 = arith.truncf %70 : vector<2x512xf32> to vector<2x512xbf16>
    %c0_74 = arith.constant 0 : index
    %c0_75 = arith.constant 0 : index
    %72 = vector.load %arg6[%c0_74, %c0_75] : memref<512x128xbf16, #tpu.memory_space<vmem>>, vector<512x128xbf16>
    %cst_76 = arith.constant dense<0.000000e+00> : vector<2x128xf32>
    %73 = tpu.matmul %71, %72, %cst_76 {dimension_numbers = #tpu.dot_dimension_numbers<[1], [0], [0], [1], [0, 0, 1, 1], [], []>} : vector<2x512xbf16>, vector<512x128xbf16>, vector<2x128xf32> -> vector<2x128xf32>
    %c0_77 = arith.constant 0 : index
    %c0_78 = arith.constant 0 : index
    %74 = vector.load %arg7[%c0_77, %c0_78] : memref<1x128xf32, #tpu.memory_space<vmem>>, vector<1x128xf32>
    %75 = vector.broadcast %74 : vector<1x128xf32> to vector<2x128xf32>
    %76 = arith.addf %73, %75 : vector<2x128xf32>
    %c0_79 = arith.constant 0 : index
    %c0_80 = arith.constant 0 : index
    %77 = vector.load %arg8[%c0_79, %c0_80] : memref<2x128xf32, #tpu.memory_space<vmem>>, vector<2x128xf32>
    tpu.vector_store %arg8[%c0_79, %c0_80], %76 {strides = array<i32>} : memref<2x128xf32, #tpu.memory_space<vmem>>, vector<2x128xf32>,
    return
  }
  func.func @transform_0(%arg0: i32) -> (i32, i32, i32, i32) {
    %c0_i32 = arith.constant 0 : i32
    %c0_i32_0 = arith.constant 0 : i32
    %c0_i32_1 = arith.constant 0 : i32
    %c0_i32_2 = arith.constant 0 : i32
    return %c0_i32, %c0_i32_0, %arg0, %c0_i32_1 : i32, i32, i32, i32
  }
  func.func @transform_1(%arg0: i32) -> (i32, i32, i32) {
    %c0_i32 = arith.constant 0 : i32
    %c0_i32_0 = arith.constant 0 : i32
    %c0_i32_1 = arith.constant 0 : i32
    %c0_i32_2 = arith.constant 0 : i32
    return %c0_i32, %c0_i32_0, %c0_i32_1 : i32, i32, i32
  }
  func.func @transform_2(%arg0: i32) -> (i32, i32) {
    %c0_i32 = arith.constant 0 : i32
    %c0_i32_0 = arith.constant 0 : i32
    %c0_i32_1 = arith.constant 0 : i32
    return %c0_i32, %c0_i32_0 : i32, i32
  }
  func.func @transform_3(%arg0: i32) -> (i32, i32, i32) {
    %c0_i32 = arith.constant 0 : i32
    %c0_i32_0 = arith.constant 0 : i32
    %c0_i32_1 = arith.constant 0 : i32
    %c0_i32_2 = arith.constant 0 : i32
    return %c0_i32, %c0_i32_0, %c0_i32_1 : i32, i32, i32
  }
  func.func @transform_4(%arg0: i32) -> (i32, i32) {
    %c0_i32 = arith.constant 0 : i32
    %c0_i32_0 = arith.constant 0 : i32
    %c0_i32_1 = arith.constant 0 : i32
    return %c0_i32, %c0_i32_0 : i32, i32
  }
  func.func @transform_5(%arg0: i32) -> (i32, i32) {
    %c0_i32 = arith.constant 0 : i32
    %c0_i32_0 = arith.constant 0 : i32
    %c0_i32_1 = arith.constant 0 : i32
    return %c0_i32, %c0_i32_0 : i32, i32
  }
  func.func @transform_6(%arg0: i32) -> (i32, i32) {
    %c0_i32 = arith.constant 0 : i32
    %c0_i32_0 = arith.constant 0 : i32
    %c0_i32_1 = arith.constant 0 : i32
    return %c0_i32, %c0_i32_0 : i32, i32
  }
  func.func @transform_7(%arg0: i32) -> (i32, i32) {
    %c0_i32 = arith.constant 0 : i32
    %c0_i32_0 = arith.constant 0 : i32
    return %arg0, %c0_i32 : i32, i32
  }
}

</mosaic_0001>

<bundles_post_ra>
// kernel: dqn_forward.3
= control target key start
LH: loop header
LB: loop body
LE: loop exit
PB: predicated region body
PF: predicated region fallthrough
CT: control target
= control target key end

     0   :  { %s705_s12 = smov 0   ;;  %s805_s0 = inlined_call_operand.vmem [shape: bf16[128,256], index: 0, kind: input, shape index: {}]   ;;  %s806_s1 = inlined_call_operand.vmem [shape: bf16[256,32], index: 1, kind: input, shape index: {}]   ;;  %s807_s2 = inlined_call_operand.vmem [shape: f32[1,32], index: 2, kind: input, shape index: {}]   ;;  %s808_s3 = inlined_call_operand.vmem [shape: bf16[128,32], index: 3, kind: output, shape index: {}]  }
   0x1 LB: > { %s531_s13 = sadd.s32 4294967295, %s683_s12   ;;  %p535_p0 = scmp.ge.s32.totalorder %s683_s12, 1  ;;  %s683_s12 = sphi %s705_s12, %s13_s12  }
   0x2   : > { %p139_p1 = scmp.lt.s32.totalorder %s683_s12, 3 }
   0x4   : > { %p140_p2 = pnand %p535_p0, %p139_p1 }
   0x5   : > { %s536_s16 = sshll.u32 (!%p140_p2), %s531_s13, 3 }
   0x6   : > { %143 = sbr.rel (%p140_p2) target bundleno = 260 (0x104), region = 32  ;;  %p165_p3 = scmp.lt.s32.totalorder (!%p140_p2), %s536_s16, 15 }
   0xb   : > { %v649_v0 = vld [vmem:[%s806_s1 + $0x78] sm:$0xff]   ;;  %v651_v2 = vld [vmem:[%s806_s1 + $0x70] sm:$0xff]   ;;  %v653_v4 = vld [vmem:[%s806_s1 + $0x68] sm:$0xff]   ;;  %s810_s16 = smov (!%p165_p3, %s536_s16), 15  ;;  %vm466_vm0 = vcmask 257024  }
   0xc   : > { %v650_v1 = vld [vmem:[%s806_s1 + $0x38] sm:$0xff]   ;;  %585 = vmatprep.subr.bf16.mxu0 %v649_v0  ;;  %625 = vmatprep.subr.bf16.mxu1 %v649_v0  ;;  %v652_v3 = vld [vmem:[%s806_s1 + $0x30] sm:$0xff]   ;;  %v654_v5 = vld [vmem:[%s806_s1 + $0x28] sm:$0xff]   ;;  %s576_s4 = sshll.u32 %s810_s16, 3  ;;  %s540_s28 = sshll.u32 %s810_s16, 2 }
   0xd   : > { %586 = vmatpush3.bf16.msra.mxu0 %v650_v1  ;;  %633 = vmatpush3.bf16.msra.mxu1 %v650_v1  ;;  %v655_v6 = vld [vmem:[%s806_s1 + $0x60] sm:$0xff]   ;;  %v657_v8 = vld [vmem:[%s806_s1 + $0x58] sm:$0xff]   ;;  %s746_s9 = scalar_lea.vmem %s805_s0, %s576_s4  ;;  %v659_v10 = vld [vmem:[%s806_s1 + $0x50] sm:$0xff]   ;;  %s784_s4 = scalar_lea.vmem %s808_s3, %s540_s28 }
   0xe   : > { %587 = vmatprep.subr.bf16.mxu0 %v651_v2  ;;  %626 = vmatprep.subr.bf16.mxu1 %v651_v2  ;;  %v656_v7 = vld [vmem:[%s806_s1 + $0x20] sm:$0xff]   ;;  %v658_v9 = vld [vmem:[%s806_s1 + $0x18] sm:$0xff]   ;;  %v660_v13 = vld [vmem:[%s806_s1 + $0x10] sm:$0xff]  }
   0xf   : > { %v667_v11 = vld [vmem:[%s746_s9 + $0x4] ss:$8 sps:$4 sm:$0xff]   ;;  %v665_v18 = vld [vmem:[%s746_s9] ss:$8 sps:$4 sm:$0xff]   ;;  %v671_v20 = vld [vmem:[%s746_s9 + $0x14] ss:$8 sps:$4 sm:$0xff]  }
  0x10   : > { %v670_v12 = vld [vmem:[%s746_s9 + $0x24] ss:$8 sps:$4 sm:$0xff]   ;;  %393 = vmatprep.mubr.bf16.mxu0 %v667_v11  ;;  %v668_v19 = vld [vmem:[%s746_s9 + $0x20] ss:$8 sps:$4 sm:$0xff]   ;;  %v673_v21 = vld [vmem:[%s746_s9 + $0x34] ss:$8 sps:$4 sm:$0xff]  }
  0x11   : > { %588 = vmatpush3.bf16.msra.mxu0 %v652_v3  ;;  %634 = vmatpush3.bf16.msra.mxu1 %v652_v3  ;;  %v661_v14 = vld [vmem:[%s806_s1 + $0x48] sm:$0xff]   ;;  %v663_v16 = vld [vmem:[%s806_s1 + $0x40] sm:$0xff]   ;;  %v675_v22 = vld [vmem:[%s746_s9 + $0x10] ss:$8 sps:$4 sm:$0xff]  }
  0x12   : > { %589 = vmatprep.subr.bf16.mxu0 %v653_v4  ;;  %627 = vmatprep.subr.bf16.mxu1 %v653_v4  ;;  %v662_v15 = vld [vmem:[%s806_s1 + $0x8] sm:$0xff]   ;;  %v664_v17 = vld [vmem:[%s806_s1] sm:$0xff]   ;;  %v676_v23 = vld [vmem:[%s746_s9 + $0x30] ss:$8 sps:$4 sm:$0xff]  }
  0x13   : > { %409 = vmatprep.mubr.bf16.mxu1 %v670_v12  ;;  %v541_v26 = vld [vmem:[%s807_s2] ss:$0 sm:$0xff] }
  0x15   : > { %590 = vmatpush3.bf16.msra.mxu0 %v654_v5  ;;  %635 = vmatpush3.bf16.msra.mxu1 %v654_v5 }
  0x16   : > { %591 = vmatprep.subr.bf16.mxu0 %v655_v6  ;;  %628 = vmatprep.subr.bf16.mxu1 %v655_v6 }
  0x19   : > { %592 = vmatpush3.bf16.msra.mxu0 %v656_v7  ;;  %636 = vmatpush3.bf16.msra.mxu1 %v656_v7 }
  0x1a   : > { %593 = vmatprep.subr.bf16.mxu0 %v657_v8  ;;  %629 = vmatprep.subr.bf16.mxu1 %v657_v8 }
  0x1d   : > { %594 = vmatpush3.bf16.msra.mxu0 %v658_v9  ;;  %637 = vmatpush3.bf16.msra.mxu1 %v658_v9 }
  0x1e   : > { %595 = vmatprep.subr.bf16.mxu0 %v659_v10  ;;  %630 = vmatprep.subr.bf16.mxu1 %v659_v10 }
  0x21   : > { %596 = vmatpush3.bf16.msra.mxu0 %v660_v13  ;;  %638 = vmatpush3.bf16.msra.mxu1 %v660_v13 }
  0x22   : > { %597 = vmatprep.subr.bf16.mxu0 %v661_v14  ;;  %631 = vmatprep.subr.bf16.mxu1 %v661_v14 }
  0x25   : > { %598 = vmatpush3.bf16.msra.mxu0 %v662_v15  ;;  %639 = vmatpush3.bf16.msra.mxu1 %v662_v15 }
  0x26   : > { %599 = vmatprep.subr.bf16.mxu0 %v663_v16  ;;  %632 = vmatprep.subr.bf16.mxu1 %v663_v16 }
  0x29   : > { %600 = vmatpush3.bf16.msra.mxu0 %v664_v17  ;;  %640 = vmatpush3.bf16.msra.mxu1 %v664_v17 }
  0x2c   : > { %394 = vmatmul.mubr.bf16.vlgmr.msra.gmra.mxu0 %v665_v18  ;;  %410 = vmatmul.mubr.bf16.vlgmr.msra.gmra.mxu1 %v668_v19 }
  0x2d   : > { %401 = vmatprep.mubr.bf16.mxu0 %v671_v20  ;;  %417 = vmatprep.mubr.bf16.mxu1 %v673_v21 }
  0x34   : > { %402 = vmatmul.mubr.bf16.gmra.mxu0 %v675_v22  ;;  %418 = vmatmul.mubr.bf16.gmra.mxu1 %v676_v23 }
  0xec   : > { %v601_v24 = vpop.f32.mrf.mxu0  ;;  %v613_v25 = vpop.f32.mrf.mxu1 }
  0xee   : > { %v602_v27 = vpop.f32.mrf.mxu0  ;;  %v614_v28 = vpop.f32.mrf.mxu1 }
  0xef   : > { %v603_v29 = vadd.f32 %v602_v27, %v601_v24  ;;  %v615_v30 = vadd.f32 %v614_v28, %v613_v25 }
  0xf0   : > { %v604_v31 = vpop.f32.mrf.mxu0  ;;  %v616_v32 = vpop.f32.mrf.mxu1 }
  0xf1   : > { %v396_v33 = vadd.f32 %v603_v29, %v541_v26  ;;  %v412_v34 = vadd.f32 %v615_v30, %v541_v26 }
  0xf2   : > { %v605_v35 = vpop.f32.mrf.mxu0  ;;  %v617_v36 = vpop.f32.mrf.mxu1 }
  0xf3   : > { %v426_v37 = vmax.f32 %v396_v33, 0.0  ;;  %v430_v38 = vmax.f32 %v412_v34, 0.0  ;;  %v606_v39 = vadd.f32 %v605_v35, %v604_v31  ;;  %v618_v40 = vadd.f32 %v617_v36, %v616_v32 }
  0xf4   : > { %v607_v41 = vpop.f32.mrf.mxu0  ;;  %v619_v42 = vpop.f32.mrf.mxu1 }
  0xf5   : > { %v577_v43 = vpack.c.bf16 %v426_v37, %v426_v37  ;;  %v581_v44 = vpack.c.bf16 %v430_v38, %v430_v38  ;;  %v399_v45 = vadd.f32 %v606_v39, %v541_v26  ;;  %v415_v46 = vadd.f32 %v618_v40, %v541_v26 }
  0xf6   : > { %v608_v47 = vpop.f32.mrf.mxu0  ;;  %v620_v48 = vpop.f32.mrf.mxu1 }
  0xf7   : > { %467 = vst.msk [vmem:[%s784_s4] sm:$0xf] %vm466_vm0, %v577_v43  ;;  %471 = vst.msk [vmem:[%s784_s4 + $0x10] sm:$0xf] %vm466_vm0, %v581_v44  ;;  %v427_v49 = vmax.f32 %v399_v45, 0.0  ;;  %v431_v50 = vmax.f32 %v415_v46, 0.0  ;;  %v609_v51 = vadd.f32 %v608_v47, %v607_v41  ;;  %v621_v52 = vadd.f32 %v620_v48, %v619_v42 }
  0xf8   : > { %v610_v53 = vpop.f32.mrf.mxu0  ;;  %v622_v54 = vpop.f32.mrf.mxu1 }
  0xf9   : > { %v578_v55 = vpack.c.bf16 %v427_v49, %v427_v49  ;;  %v582_v56 = vpack.c.bf16 %v431_v50, %v431_v50  ;;  %v404_v57 = vadd.f32 %v609_v51, %v541_v26  ;;  %v420_v58 = vadd.f32 %v621_v52, %v541_v26 }
  0xfa   : > { %v611_v59 = vpop.f32.mrf.mxu0  ;;  %v623_v60 = vpop.f32.mrf.mxu1 }
  0xfb   : > { %468 = vst.msk [vmem:[%s784_s4 + $0x4] sm:$0xf] %vm466_vm0, %v578_v55  ;;  %472 = vst.msk [vmem:[%s784_s4 + $0x14] sm:$0xf] %vm466_vm0, %v582_v56  ;;  %v428_v61 = vmax.f32 %v404_v57, 0.0  ;;  %v432_v62 = vmax.f32 %v420_v58, 0.0  ;;  %v612_v63 = vadd.f32 %v611_v59, %v610_v53  ;;  %v624_v0 = vadd.f32 %v623_v60, %v622_v54 }
  0xfd   : > { %v579_v1 = vpack.c.bf16 %v428_v61, %v428_v61  ;;  %v583_v2 = vpack.c.bf16 %v432_v62, %v432_v62  ;;  %v407_v3 = vadd.f32 %v612_v63, %v541_v26  ;;  %v423_v4 = vadd.f32 %v624_v0, %v541_v26 }
  0xff   : > { %469 = vst.msk [vmem:[%s784_s4 + $0x8] sm:$0xf] %vm466_vm0, %v579_v1  ;;  %473 = vst.msk [vmem:[%s784_s4 + $0x18] sm:$0xf] %vm466_vm0, %v583_v2  ;;  %v429_v5 = vmax.f32 %v407_v3, 0.0  ;;  %v433_v6 = vmax.f32 %v423_v4, 0.0 }
 0x101   : > { %v580_v7 = vpack.c.bf16 %v429_v5, %v429_v5  ;;  %v584_v8 = vpack.c.bf16 %v433_v6, %v433_v6 }
 0x103   : > { %470 = vst.msk [vmem:[%s784_s4 + $0xc] sm:$0xf] %vm466_vm0, %v580_v7  ;;  %474 = vst.msk [vmem:[%s784_s4 + $0x1c] sm:$0xf] %vm466_vm0, %v584_v8 }
 0x104 PF: > { %s13_s12 = sadd.s32 1, %s683_s12  }
 0x105   : > { %p10_p4 = scmp.ge.s32.totalorder %s13_s12, 4  }
 0x107   :  { %12 = sbr.rel (!%p10_p4) target bundleno = 1 (0x1), region = 62 }

// kernel: dqn_forward.4
= control target key start
LH: loop header
LB: loop body
LE: loop exit
PB: predicated region body
PF: predicated region fallthrough
CT: control target
= control target key end

     0   :  { %s1151_s12 = smov 0   ;;  %s1153_s13 = smov 0   ;;  %s1333_s0 = inlined_call_operand.vmem [shape: bf16[18,512], index: 0, kind: input, shape index: {}]   ;;  %s1334_s1 = inlined_call_operand.vmem [shape: bf16[512,64], index: 1, kind: input, shape index: {}]   ;;  %s1335_s2 = inlined_call_operand.vmem [shape: f32[1,64], index: 2, kind: input, shape index: {}]   ;;  %s1336_s3 = inlined_call_operand.vmem [shape: bf16[18,64], index: 3, kind: output, shape index: {}]  }
   0x1   :  { %s1155_s14 = smov 0  }
   0x2 LB: > { %s1164_s15 = sadd.s32 4294967295, %s1097_s14   ;;  %s1166_s16 = sadd.s32 1, %s1097_s14   ;;  %s1097_s14 = sphi %s1155_s14, %s1340_s14   ;;  %s1093_s13 = sphi %s1153_s13, %s1339_s13   ;;  %s1089_s12 = sphi %s1151_s12, %s1338_s12  }
   0x3   : > { %s85_s17 = ssub.s32 %s1097_s14, %s1166_s16  ;;  %s88_s18 = sadd.s32 1, %s1093_s13 }
   0x4   : > { %p86_p0 = scmp.eq.s32.totalorder %s85_s17, 0  ;;  %p98_p1 = scmp.ne.s32.totalorder %s1093_s13, %s1089_s12 }
   0x5   : > { %p99_p2 = scmp.eq.s32.totalorder %s1164_s15, 1  ;;  %p806_p3 = scmp.ge.s32.totalorder %s1097_s14, 1 }
   0x6   : > { %s1174_s19 = scalar_select %p86_p0, %s1093_s13, %s88_s18  }
   0x7   : > { %p1176_p4 = por %p99_p2, %p98_p1  ;;  %p149_p5 = scmp.lt.s32.totalorder %s1097_s14, 3 }
   0x9   : > { %p150_p6 = pnand %p806_p3, %p149_p5 }
   0xa   : > { %s1229_s5 = sshll.u32 (!%p150_p6), %s1164_s15, 1  ;;  %s175_s4 = sand.u32 (!%p150_p6), 1, %s1089_s12  }
   0xb   : > { %153 = sbr.rel (%p150_p6) target bundleno = 299 (0x12b), region = 32  ;;  %p184_p7 = scmp.lt.s32.totalorder (!%p150_p6), %s1229_s5, 2 }
   0xc   : > { %s807_s6 = sshll.u32 (!%p150_p6), %s175_s4, 3 }
   0xd   : > { %s1288_s7 = scalar_lea.vmem (!%p150_p6), [#allocation2], %s807_s6  }
  0x10   : > { %v1005_v0 = vld [vmem:[%s1334_s1 + $0x78] sm:$0xff]   ;;  %v1009_v4 = vld [vmem:[%s1334_s1 + $0x70] sm:$0xff]   ;;  %v1013_v8 = vld [vmem:[%s1334_s1 + $0x68] sm:$0xff]   ;;  %s185_s26 = scalar_select %p184_p7, %s1229_s5, 2  ;;  %vm580_vm0 = vcmask 519168  }
  0x11   : > { %v1006_v1 = vld [vmem:[%s1334_s1 + $0xf8] sm:$0xff]   ;;  %873 = vmatprep.subr.bf16.mxu0 %v1005_v0  ;;  %v1010_v5 = vld [vmem:[%s1334_s1 + $0xf0] sm:$0xff]   ;;  %v1014_v9 = vld [vmem:[%s1334_s1 + $0xe8] sm:$0xff]   ;;  %s591_s12 = ssub.s32 (%p1176_p4), 3, %s1229_s5  ;;  %s870_s8 = sshll.u32 (%p1176_p4), %s1164_s15, 3 }
  0x12   : > { %v1007_v2 = vld [vmem:[%s1334_s1 + $0x38] sm:$0xff]   ;;  %895 = vmatprep.subr.bf16.mxu1 %v1006_v1  ;;  %v1011_v6 = vld [vmem:[%s1334_s1 + $0x30] sm:$0xff]   ;;  %v1015_v10 = vld [vmem:[%s1334_s1 + $0x28] sm:$0xff]   ;;  %s867_s9 = sshll.u32 %s185_s26, 4  ;;  %p592_p8 = scmp.lt.s32.totalorder (%p1176_p4), %s591_s12, 2 }
  0x13   : > { %v1008_v3 = vld [vmem:[%s1334_s1 + $0xb8] sm:$0xff]   ;;  %874 = vmatpush3.bf16.msra.mxu0 %v1007_v2  ;;  %v1012_v7 = vld [vmem:[%s1334_s1 + $0xb0] sm:$0xff]   ;;  %v1016_v11 = vld [vmem:[%s1334_s1 + $0xa8] sm:$0xff]   ;;  %s188_s24 = scalar_lea.vmem %s1333_s0, %s867_s9  ;;  %s1299_s11 = scalar_lea.vmem (%p1176_p4), %s1336_s3, %s870_s8  }
  0x14   : > { %896 = vmatpush3.bf16.msra.mxu1 %v1008_v3  ;;  %875 = vmatprep.subr.bf16.mxu0 %v1009_v4  ;;  %v1017_v12 = vld [vmem:[%s1334_s1 + $0x60] sm:$0xff]   ;;  %v1021_v16 = vld [vmem:[%s1334_s1 + $0x58] sm:$0xff]   ;;  %v1025_v20 = vld [vmem:[%s1334_s1 + $0x50] sm:$0xff]  }
  0x15   : > { %897 = vmatprep.subr.bf16.mxu1 %v1010_v5  ;;  %v1018_v13 = vld [vmem:[%s1334_s1 + $0xe0] sm:$0xff]   ;;  %v1022_v17 = vld [vmem:[%s1334_s1 + $0xd8] sm:$0xff]   ;;  %v1026_v21 = vld [vmem:[%s1334_s1 + $0xd0] sm:$0xff]  }
  0x16   : > { %v1019_v14 = vld [vmem:[%s1334_s1 + $0x20] sm:$0xff]   ;;  %v1023_v18 = vld [vmem:[%s1334_s1 + $0x18] sm:$0xff]   ;;  %v1027_v22 = vld [vmem:[%s1334_s1 + $0x10] sm:$0xff]  }
  0x17   : > { %876 = vmatpush3.bf16.msra.mxu0 %v1011_v6  ;;  %v1020_v15 = vld [vmem:[%s1334_s1 + $0xa0] sm:$0xff]   ;;  %v1024_v19 = vld [vmem:[%s1334_s1 + $0x98] sm:$0xff]   ;;  %v1028_v23 = vld [vmem:[%s1334_s1 + $0x90] sm:$0xff]  }
  0x18   : > { %898 = vmatpush3.bf16.msra.mxu1 %v1012_v7  ;;  %877 = vmatprep.subr.bf16.mxu0 %v1013_v8  ;;  %v1029_v24 = vld [vmem:[%s1334_s1 + $0x48] sm:$0xff]   ;;  %v1033_v28 = vld [vmem:[%s1334_s1 + $0x40] sm:$0xff]  }
  0x19   : > { %899 = vmatprep.subr.bf16.mxu1 %v1014_v9  ;;  %v1030_v25 = vld [vmem:[%s1334_s1 + $0xc8] sm:$0xff]   ;;  %v1034_v29 = vld [vmem:[%s1334_s1 + $0xc0] sm:$0xff]  }
  0x1a   : > { %v1031_v26 = vld [vmem:[%s1334_s1 + $0x8] sm:$0xff]   ;;  %v1035_v30 = vld [vmem:[%s1334_s1] sm:$0xff]  }
  0x1b   : > { %878 = vmatpush3.bf16.msra.mxu0 %v1015_v10  ;;  %v1032_v27 = vld [vmem:[%s1334_s1 + $0x88] sm:$0xff]   ;;  %v1036_v31 = vld [vmem:[%s1334_s1 + $0x80] sm:$0xff]  }
  0x1c   : > { %900 = vmatpush3.bf16.msra.mxu1 %v1016_v11  ;;  %879 = vmatprep.subr.bf16.mxu0 %v1017_v12  ;;  %v1037_v32 = vld [vmem:[%s188_s24] ss:$16 sps:$4 sm:$0xff]   ;;  %v1039_v33 = vld [vmem:[%s188_s24 + $0x4] ss:$16 sps:$4 sm:$0xff]   ;;  %v1040_v34 = vld [vmem:[%s188_s24 + $0x8] ss:$16 sps:$4 sm:$0xff]  }
  0x1d   : > { %901 = vmatprep.subr.bf16.mxu1 %v1018_v13  ;;  %v1042_v35 = vld [vmem:[%s188_s24 + $0xc] ss:$16 sps:$4 sm:$0xff]   ;;  %520 = vmatprep.mubr.bf16.mxu0 %v1039_v33  ;;  %v811_v38 = vld [vmem:[%s1335_s2] ss:$0 sm:$0xff] }
  0x1e   : > { %561 = vmatprep.mubr.bf16.mxu1 %v1042_v35 }
  0x1f   : > { %880 = vmatpush3.bf16.msra.mxu0 %v1019_v14 }
  0x20   : > { %902 = vmatpush3.bf16.msra.mxu1 %v1020_v15  ;;  %881 = vmatprep.subr.bf16.mxu0 %v1021_v16 }
  0x21   : > { %903 = vmatprep.subr.bf16.mxu1 %v1022_v17 }
  0x23   : > { %882 = vmatpush3.bf16.msra.mxu0 %v1023_v18 }
  0x24   : > { %904 = vmatpush3.bf16.msra.mxu1 %v1024_v19  ;;  %883 = vmatprep.subr.bf16.mxu0 %v1025_v20 }
  0x25   : > { %905 = vmatprep.subr.bf16.mxu1 %v1026_v21 }
  0x27   : > { %884 = vmatpush3.bf16.msra.mxu0 %v1027_v22 }
  0x28   : > { %906 = vmatpush3.bf16.msra.mxu1 %v1028_v23  ;;  %885 = vmatprep.subr.bf16.mxu0 %v1029_v24 }
  0x29   : > { %907 = vmatprep.subr.bf16.mxu1 %v1030_v25 }
  0x2b   : > { %886 = vmatpush3.bf16.msra.mxu0 %v1031_v26 }
  0x2c   : > { %908 = vmatpush3.bf16.msra.mxu1 %v1032_v27  ;;  %887 = vmatprep.subr.bf16.mxu0 %v1033_v28 }
  0x2d   : > { %909 = vmatprep.subr.bf16.mxu1 %v1034_v29 }
  0x2f   : > { %888 = vmatpush3.bf16.msra.mxu0 %v1035_v30 }
  0x30   : > { %910 = vmatpush3.bf16.msra.mxu1 %v1036_v31 }
  0x32   : > { %521 = vmatmul.mubr.bf16.vlgmr.msra.gmra.mxu0 %v1037_v32 }
  0x33   : > { %562 = vmatmul.mubr.bf16.vlgmr.msra.gmra.mxu1 %v1040_v34 }
  0xf2   : > { %v889_v36 = vpop.f32.mrf.mxu0 }
  0xf3   : > { %v911_v37 = vpop.f32.mrf.mxu1 }
  0xf4   : > { %v890_v39 = vpop.f32.mrf.mxu0 }
  0xf5   : > { %v891_v40 = vadd.f32 %v890_v39, %v889_v36  ;;  %v912_v41 = vpop.f32.mrf.mxu1 }
  0xf6   : > { %v892_v42 = vpop.f32.mrf.mxu0  ;;  %v913_v44 = vadd.f32 %v912_v41, %v911_v37 }
  0xf7   : > { %v523_v43 = vadd.f32 %v891_v40, %v811_v38  ;;  %v914_v45 = vpop.f32.mrf.mxu1 }
  0xf8   : > { %v893_v46 = vpop.f32.mrf.mxu0 }
  0xf9   : > { %v564_v47 = vadd.f32 %v913_v44, %v523_v43  ;;  %v894_v48 = vadd.f32 %v893_v46, %v892_v42  ;;  %v915_v49 = vpop.f32.mrf.mxu1 }
  0xfa   : > { %v916_v52 = vadd.f32 %v915_v49, %v914_v45 }
  0xfb   : > { %v570_v50 = vmax.f32 %v564_v47, 0.0  ;;  %v526_v51 = vadd.f32 %v894_v48, %v811_v38 }
  0xfd   : > { %v868_v53 = vpack.c.bf16 %v570_v50, %v570_v50  ;;  %v567_v54 = vadd.f32 %v916_v52, %v526_v51 }
  0xff   : > { %581 = vst.msk [vmem:[%s1288_s7] sm:$0xf] %vm580_vm0, %v868_v53  ;;  %v571_v55 = vmax.f32 %v567_v54, 0.0  ;;  %589 = sbr.rel (!%p1176_p4) target bundleno = 299 (0x12b), region = 36 }
 0x101   : > { %v869_v56 = vpack.c.bf16 %v571_v55, %v571_v55 }
 0x103   : > { %582 = vst.msk [vmem:[%s1288_s7 + $0x4] sm:$0xf] %vm580_vm0, %v869_v56 }
 0x104   : > { %s1342_s12 = smov (!%p592_p8, %s591_s12), 2 }
 0x105   : > { %s852_s14 = sshll.u32 %s1342_s12, 6 }
 0x106   : > { %p855_p9 = scmp.eq.s32.totalorder %s852_s14, 0 }
 0x107   : > { %s1305_s17 = sshrl.u32 (!%p855_p9), %s1342_s12, 1 }
 0x108   : > { %600 = sbr.rel (%p855_p9) target bundleno = 299 (0x12b), region = 40  ;;  %p856_p10 = scmp.le.s32.totalorder (!%p855_p9), %s1305_s17, 0 }
 0x10d   : > { %759 = sbr.rel (%p856_p10) target bundleno = 282 (0x11a), region = 112  ;;  %s1099_s15 = smov (!%p856_p10), %s1299_s11  }
 0x10e   : > { %s1103_s20 = smov (!%p856_p10), %s1288_s7   ;;  %s1107_s5 = smov (!%p856_p10), 0  }
 0x10f   : > { %s1111_s18 = smov (!%p856_p10), 0  }
 0x112 LB: >> { %v617_v57 = vld [vmem:[%s1105_s20] sm:$0xf]  ;;  %v619_v58 = vld [vmem:[%s1105_s20 + $0x4] sm:$0xf]  ;;  %s621_s21 = sadd.s32 1, %s1109_s5  ;;  %s611_s18 = sadd.s32 1, %s1113_s18   ;;  %s1113_s18 = sphi %s1111_s18, %s611_s18   ;;  %s1109_s5 = sphi %s1107_s5, %s1108_s5   ;;  %s1105_s20 = sphi %s1103_s20, %s626_s20   ;;  %s1101_s15 = sphi %s1099_s15, %s627_s15  }
 0x113   : >> { %618 = vst [vmem:[%s1101_s15] sm:$0xf] %v617_v57  ;;  %620 = vst [vmem:[%s1101_s15 + $0x4] sm:$0xf] %v619_v58  ;;  %p622_p11 = scmp.ge.s32.totalorder %s621_s21, %s1305_s17  ;;  %p610_p12 = scmp.ge.s32.totalorder %s611_s18, %s1305_s17 }
 0x115   : >> { %s1344_s21 = smov (%p622_p11, %s621_s21), 0  ;;  %613 = sbr.rel (!%p610_p12) target bundleno = 274 (0x112), region = 118 }
 0x116   : >> { %s857_s22 = sshll.u32 %s1344_s21, 3  ;;  %s1108_s5 = smov %s1344_s21  }
 0x117   : >> { %s626_s20 = scalar_lea.vmem %s1288_s7, %s857_s22 [#allocation2]   ;;  %s627_s15 = scalar_lea.vmem %s1299_s11, %s857_s22  }
 0x11a PF: > { %s1315_s23 = sand.u32 1, %s1342_s12   ;;  %s871_s24 = sshll.u32 %s1305_s17, 3 }
 0x11b   : > { %s632_s25 = scalar_lea.vmem %s1288_s7, %s871_s24 [#allocation2]   ;;  %s634_s26 = scalar_lea.vmem %s1299_s11, %s871_s24  }
 0x11c   : > { %p862_p13 = scmp.le.s32.totalorder %s1315_s23, 0 }
 0x11d   : > { %s1115_s27 = smov (!%p862_p13), %s634_s26   ;;  %s1119_s28 = smov (!%p862_p13), %s632_s25  }
 0x11e   : > { %773 = sbr.rel (%p862_p13) target bundleno = 299 (0x12b), region = 123  ;;  %s1123_s29 = smov (!%p862_p13), 0  }
 0x11f   : > { %s1127_s30 = smov (!%p862_p13), 0  }
 0x123 LB: >> { %v644_v59 = vld [vmem:[%s1121_s28] sm:$0xf]  ;;  %s646_s4 = sadd.s32 1, %s1125_s29  ;;  %s638_s30 = sadd.s32 1, %s1129_s30   ;;  %s1129_s30 = sphi %s1127_s30, %s638_s30   ;;  %s1125_s29 = sphi %s1123_s29, %s1124_s29   ;;  %s1121_s28 = sphi %s1119_s28, %s651_s28   ;;  %s1117_s27 = sphi %s1115_s27, %s652_s27  }
 0x124   : >> { %645 = vst [vmem:[%s1117_s27] sm:$0xf] %v644_v59  ;;  %p647_p0 = scmp.ge.s32.totalorder %s646_s4, %s1315_s23  ;;  %p637_p1 = scmp.ge.s32.totalorder %s638_s30, %s1315_s23 }
 0x126   : >> { %s1346_s4 = smov (%p647_p0, %s646_s4), 0  ;;  %640 = sbr.rel (!%p637_p1) target bundleno = 291 (0x123), region = 129 }
 0x127   : >> { %s863_s6 = sshll.u32 %s1346_s4, 2  ;;  %s1124_s29 = smov %s1346_s4  }
 0x128   : >> { %s651_s28 = scalar_lea.vmem %s632_s25, %s863_s6 [#allocation2]   ;;  %s652_s27 = scalar_lea.vmem %s634_s26, %s863_s6  }
 0x12b PF: > { %p10_p2 = scmp.ge.s32.totalorder %s1166_s16, 4   ;;  %s1338_s12 = smov %s1093_s13 }
 0x12c   : > { %s1339_s13 = smov %s1174_s19  ;;  %s1340_s14 = smov %s1166_s16 }
 0x12d   :  { %12 = sbr.rel (!%p10_p2) target bundleno = 2 (0x2), region = 140 }

// kernel: dqn_forward.5
= control target key start
LH: loop header
LB: loop body
LE: loop exit
PB: predicated region body
PF: predicated region fallthrough
CT: control target
= control target key end

     0   :  { %v1799_v1 = vmov 0.0   ;;  %vm1800_vm0 = vmmov 0   ;;  %vm72_vm1 = vcmask 523264   ;;  %s2199_s0 = inlined_call_operand.vmem [shape: bf16[3,3,2,64], index: 0, kind: input, shape index: {}]   ;;  %s2200_s1 = inlined_call_operand.vmem [shape: bf16[9,64,64], index: 1, kind: input, shape index: {}]   ;;  %s2201_s2 = inlined_call_operand.vmem [shape: f32[1,64], index: 2, kind: input, shape index: {}]   ;;  %s2202_s3 = inlined_call_operand.vmem [shape: bf16[1,64,512], index: 3, kind: input, shape index: {}]   ;;  %s2203_s4 = inlined_call_operand.vmem [shape: f32[1,512], index: 4, kind: input, shape index: {}]   ;;  %s2204_s5 = inlined_call_operand.vmem [shape: bf16[512,128], index: 5, kind: input, shape index: {}]   ;;  %s2205_s6 = inlined_call_operand.vmem [shape: f32[1,128], index: 6, kind: input, shape index: {}]   ;;  %s2206_s7 = inlined_call_operand.hbm [shape: f32[2,128], index: 7, kind: output, shape index: {}]  }
   0x1   :  { %v1685_v0 = vld [vmem:[%s2200_s1 + $0x38] sm:$0xff]   ;;  %1573 = vmatprep.subr.bf16.mxu0 %v1799_v1  ;;  %1585 = vmatprep.subr.bf16.mxu1 %v1799_v1  ;;  %v1687_v3 = vld [vmem:[%s2200_s1 + $0x30] sm:$0xff]   ;;  %v1689_v5 = vld [vmem:[%s2200_s1 + $0x28] sm:$0xff]  }
   0x2   :  { %v1686_v2 = vld [vmem:[%s2200_s1 + $0x18] sm:$0xff]   ;;  %1574 = vmatpush3.bf16.msra.mxu0 %v1685_v0  ;;  %1581 = vmatprep.mubr.msk.bf16.mxu0 %vm1800_vm0, %v1799_v1  ;;  %v1688_v4 = vld [vmem:[%s2200_s1 + $0x10] sm:$0xff]   ;;  %v1690_v6 = vld [vmem:[%s2200_s1 + $0x8] sm:$0xff]  }
   0x3   :  { %1586 = vmatpush3.bf16.msra.mxu1 %v1686_v2  ;;  %1575 = vmatprep.subr.bf16.mxu0 %v1799_v1  ;;  %v1691_v7 = vld [vmem:[%s2200_s1 + $0x20] sm:$0xff]   ;;  %v1693_v11 = vld [vmem:[%s2200_s1 + $0x58] sm:$0xff]   ;;  %v1695_v13 = vld [vmem:[%s2200_s1 + $0x50] sm:$0xff]  }
   0x4   :  { %1587 = vmatprep.subr.bf16.mxu1 %v1799_v1  ;;  %1593 = vmatprep.mubr.msk.bf16.mxu1 %vm1800_vm0, %v1799_v1  ;;  %v1692_v8 = vld [vmem:[%s2200_s1] sm:$0xff]   ;;  %v1694_v12 = vld [vmem:[%s2200_s1 + $0x78] sm:$0xff]   ;;  %v1696_v14 = vld [vmem:[%s2200_s1 + $0x70] sm:$0xff]  }
   0x5   :  { %v1315_v9 = vld [vmem:[%s2199_s0 + $0x1] sm:$0x1]  ;;  %v28_v10 = vld [vmem:[%s2199_s0] sm:$0x1]  ;;  %v1697_v15 = vld [vmem:[%s2200_s1 + $0x48] sm:$0xff]  }
   0x6   :  { %1576 = vmatpush3.bf16.msra.mxu0 %v1687_v3  ;;  %v1698_v16 = vld [vmem:[%s2200_s1 + $0x68] sm:$0xff]   ;;  %v1699_v17 = vld [vmem:[%s2200_s1 + $0x40] sm:$0xff]   ;;  %v1701_v20 = vld [vmem:[%s2200_s1 + $0x98] sm:$0xff]  }
   0x7   :  { %1588 = vmatpush3.bf16.msra.mxu1 %v1688_v4  ;;  %1577 = vmatprep.subr.bf16.mxu0 %v1799_v1  ;;  %v1700_v18 = vld [vmem:[%s2200_s1 + $0x60] sm:$0xff]   ;;  %v1702_v22 = vld [vmem:[%s2200_s1 + $0xb8] sm:$0xff]   ;;  %v1703_v23 = vld [vmem:[%s2200_s1 + $0x90] sm:$0xff]  }
   0x8   :  { %1589 = vmatprep.subr.bf16.mxu1 %v1799_v1  ;;  %v1334_v19 = vld [vmem:[%s2199_s0 + $0x2] sm:$0x1]  ;;  %v1348_v21 = vld [vmem:[%s2199_s0 + $0x3] sm:$0x1]  ;;  %v1704_v24 = vld [vmem:[%s2200_s1 + $0xb0] sm:$0xff]  }
   0x9   :  { %v1705_v25 = vld [vmem:[%s2200_s1 + $0x88] sm:$0xff]   ;;  %v1707_v27 = vld [vmem:[%s2200_s1 + $0x80] sm:$0xff]   ;;  %v1709_v30 = vld [vmem:[%s2200_s1 + $0xd8] sm:$0xff]  }
   0xa   :  { %1578 = vmatpush3.bf16.msra.mxu0 %v1689_v5  ;;  %v1706_v26 = vld [vmem:[%s2200_s1 + $0xa8] sm:$0xff]   ;;  %v1708_v28 = vld [vmem:[%s2200_s1 + $0xa0] sm:$0xff]   ;;  %v1710_v32 = vld [vmem:[%s2200_s1 + $0xf8] sm:$0xff]  }
   0xb   :  { %1590 = vmatpush3.bf16.msra.mxu1 %v1690_v6  ;;  %1579 = vmatprep.subr.bf16.mxu0 %v1799_v1  ;;  %v1362_v29 = vld [vmem:[%s2199_s0 + $0x4] sm:$0x1]  ;;  %v1376_v31 = vld [vmem:[%s2199_s0 + $0x5] sm:$0x1]  ;;  %v1711_v33 = vld [vmem:[%s2200_s1 + $0xd0] sm:$0xff]  }
   0xc   :  { %1591 = vmatprep.subr.bf16.mxu1 %v1799_v1  ;;  %v1712_v34 = vld [vmem:[%s2200_s1 + $0xf0] sm:$0xff]   ;;  %v1713_v35 = vld [vmem:[%s2200_s1 + $0xc8] sm:$0xff]   ;;  %v1715_v37 = vld [vmem:[%s2200_s1 + $0xc0] sm:$0xff]  }
   0xd   :  { %v1714_v36 = vld [vmem:[%s2200_s1 + $0xe8] sm:$0xff]   ;;  %v1716_v38 = vld [vmem:[%s2200_s1 + $0xe0] sm:$0xff]   ;;  %v1717_v40 = vld [vmem:[%s2200_s1 + $0x118] sm:$0xff]  }
   0xe   :  { %1580 = vmatpush3.bf16.msra.mxu0 %v1691_v7  ;;  %v1390_v39 = vld [vmem:[%s2199_s0 + $0x6] sm:$0x1]  ;;  %v1404_v41 = vld [vmem:[%s2199_s0 + $0x7] sm:$0x1] }
   0xf   :  { %1592 = vmatpush3.bf16.msra.mxu1 %v1692_v8  ;;  %1597 = vmatprep.subr.bf16.mxu0 %v1799_v1 }
  0x10   :  { %1609 = vmatprep.subr.bf16.mxu1 %v1799_v1 }
  0x11   :  { %1582 = vmatmul.mubr.msk.bf16.vlgmr.msra.gmra.mxu0 %vm72_vm1, %v1315_v9 }
  0x12   :  { %1594 = vmatmul.mubr.msk.bf16.vlgmr.msra.gmra.mxu1 %vm72_vm1, %v28_v10  ;;  %1598 = vmatpush3.bf16.msra.mxu0 %v1693_v11 }
  0x13   :  { %1610 = vmatpush3.bf16.msra.mxu1 %v1694_v12  ;;  %1599 = vmatprep.subr.bf16.mxu0 %v1799_v1 }
  0x14   :  { %1611 = vmatprep.subr.bf16.mxu1 %v1799_v1  ;;  %1605 = vmatprep.mubr.msk.bf16.mxu0 %vm1800_vm0, %v1799_v1 }
  0x15   :  { %1617 = vmatprep.mubr.msk.bf16.mxu1 %vm1800_vm0, %v1799_v1 }
  0x16   :  { %1600 = vmatpush3.bf16.msra.mxu0 %v1695_v13 }
  0x17   :  { %1612 = vmatpush3.bf16.msra.mxu1 %v1696_v14  ;;  %1601 = vmatprep.subr.bf16.mxu0 %v1799_v1 }
  0x18   :  { %1613 = vmatprep.subr.bf16.mxu1 %v1799_v1 }
  0x1a   :  { %1602 = vmatpush3.bf16.msra.mxu0 %v1697_v15 }
  0x1b   :  { %1614 = vmatpush3.bf16.msra.mxu1 %v1698_v16  ;;  %1603 = vmatprep.subr.bf16.mxu0 %v1799_v1 }
  0x1c   :  { %1615 = vmatprep.subr.bf16.mxu1 %v1799_v1 }
  0x1e   :  { %1604 = vmatpush3.bf16.msra.mxu0 %v1699_v17 }
  0x1f   :  { %1616 = vmatpush3.bf16.msra.mxu1 %v1700_v18  ;;  %1621 = vmatprep.subr.bf16.mxu0 %v1799_v1 }
  0x20   :  { %1633 = vmatprep.subr.bf16.mxu1 %v1799_v1 }
  0x21   :  { %1606 = vmatmul.mubr.msk.bf16.vlgmr.msra.gmra.mxu0 %vm72_vm1, %v1334_v19 }
  0x22   :  { %1622 = vmatpush3.bf16.msra.mxu0 %v1701_v20  ;;  %1618 = vmatmul.mubr.msk.bf16.vlgmr.msra.gmra.mxu1 %vm72_vm1, %v1348_v21 }
  0x23   :  { %1634 = vmatpush3.bf16.msra.mxu1 %v1702_v22  ;;  %1623 = vmatprep.subr.bf16.mxu0 %v1799_v1 }
  0x24   :  { %1635 = vmatprep.subr.bf16.mxu1 %v1799_v1  ;;  %1629 = vmatprep.mubr.msk.bf16.mxu0 %vm1800_vm0, %v1799_v1 }
  0x25   :  { %1641 = vmatprep.mubr.msk.bf16.mxu1 %vm1800_vm0, %v1799_v1 }
  0x26   :  { %1624 = vmatpush3.bf16.msra.mxu0 %v1703_v23 }
  0x27   :  { %1636 = vmatpush3.bf16.msra.mxu1 %v1704_v24  ;;  %1625 = vmatprep.subr.bf16.mxu0 %v1799_v1 }
  0x28   :  { %1637 = vmatprep.subr.bf16.mxu1 %v1799_v1 }
  0x2a   :  { %1626 = vmatpush3.bf16.msra.mxu0 %v1705_v25 }
  0x2b   :  { %1638 = vmatpush3.bf16.msra.mxu1 %v1706_v26  ;;  %1627 = vmatprep.subr.bf16.mxu0 %v1799_v1 }
  0x2c   :  { %1639 = vmatprep.subr.bf16.mxu1 %v1799_v1 }
  0x2e   :  { %1628 = vmatpush3.bf16.msra.mxu0 %v1707_v27 }
  0x2f   :  { %1640 = vmatpush3.bf16.msra.mxu1 %v1708_v28  ;;  %1645 = vmatprep.subr.bf16.mxu0 %v1799_v1 }
  0x30   :  { %1657 = vmatprep.subr.bf16.mxu1 %v1799_v1 }
  0x31   :  { %1630 = vmatmul.mubr.msk.bf16.vlgmr.msra.gmra.mxu0 %vm72_vm1, %v1362_v29 }
  0x32   :  { %1646 = vmatpush3.bf16.msra.mxu0 %v1709_v30  ;;  %1642 = vmatmul.mubr.msk.bf16.vlgmr.msra.gmra.mxu1 %vm72_vm1, %v1376_v31 }
  0x33   :  { %1658 = vmatpush3.bf16.msra.mxu1 %v1710_v32  ;;  %1647 = vmatprep.subr.bf16.mxu0 %v1799_v1 }
  0x34   :  { %1659 = vmatprep.subr.bf16.mxu1 %v1799_v1  ;;  %1653 = vmatprep.mubr.msk.bf16.mxu0 %vm1800_vm0, %v1799_v1 }
  0x35   :  { %1665 = vmatprep.mubr.msk.bf16.mxu1 %vm1800_vm0, %v1799_v1 }
  0x36   :  { %1648 = vmatpush3.bf16.msra.mxu0 %v1711_v33 }
  0x37   :  { %1660 = vmatpush3.bf16.msra.mxu1 %v1712_v34  ;;  %1649 = vmatprep.subr.bf16.mxu0 %v1799_v1 }
  0x38   :  { %1661 = vmatprep.subr.bf16.mxu1 %v1799_v1 }
  0x3a   :  { %1650 = vmatpush3.bf16.msra.mxu0 %v1713_v35 }
  0x3b   :  { %1662 = vmatpush3.bf16.msra.mxu1 %v1714_v36  ;;  %1651 = vmatprep.subr.bf16.mxu0 %v1799_v1 }
  0x3c   :  { %1663 = vmatprep.subr.bf16.mxu1 %v1799_v1 }
  0x3e   :  { %1652 = vmatpush3.bf16.msra.mxu0 %v1715_v37 }
  0x3f   :  { %1664 = vmatpush3.bf16.msra.mxu1 %v1716_v38  ;;  %1669 = vmatprep.subr.bf16.mxu0 %v1799_v1 }
  0x41   :  { %1654 = vmatmul.mubr.msk.bf16.vlgmr.msra.gmra.mxu0 %vm72_vm1, %v1390_v39 }
  0x42   :  { %12 = vsyncpa [#allocation3], 0  ;;  %1670 = vmatpush3.bf16.msra.mxu0 %v1717_v40  ;;  %1666 = vmatmul.mubr.msk.bf16.vlgmr.msra.gmra.mxu1 %vm72_vm1, %v1404_v41  ;;  %v1718_v42 = vld [vmem:[%s2200_s1 + $0x110] sm:$0xff]   ;;  %v1719_v43 = vld [vmem:[%s2200_s1 + $0x108] sm:$0xff]   ;;  %v1801_v62 = vmov 0   ;;  %s1802_s16 = smov [#allocation2]  }
  0x43   :  { %1671 = vmatprep.subr.bf16.mxu0 %v1799_v1  ;;  %1677 = vmatprep.mubr.msk.bf16.mxu0 %vm1800_vm0, %v1799_v1  ;;  %v1720_v44 = vld [vmem:[%s2200_s1 + $0x100] sm:$0xff]   ;;  %v1418_v45 = vld [vmem:[%s2199_s0 + $0x8] sm:$0x1]  ;;  %v1726_v49 = vld [vmem:[%s2202_s3 + $0x6c] ss:$16 sps:$4 sm:$0xff]   ;;  %s1307_s17 = sshll.u32 %s1802_s16, 4  ;;  %s1308_s17 = int_to_ptr.vmem [resolvable:$true] %s1307_s17 }
  0x44   :  { %v1721_v46 = vld [vmem:[%s2202_s3 + $0x60] ss:$16 sps:$4 sm:$0xff]   ;;  %v1723_v47 = vld [vmem:[%s2202_s3 + $0x64] ss:$16 sps:$4 sm:$0xff]   ;;  %v1724_v48 = vld [vmem:[%s2202_s3 + $0x68] ss:$16 sps:$4 sm:$0xff]   ;;  %899 = vmatprep.mubr.bf16.mxu1 %v1801_v62  ;;  %p1782_p1 = scmp.lt.s32.totalorder %s1308_s17, %s1308_s17 }
  0x45   :  { %v1729_v50 = vld [vmem:[%s2202_s3 + $0x44] ss:$16 sps:$4 sm:$0xff]   ;;  %875 = vmatprep.subr.bf16.mxu1 %v1723_v47  ;;  %v1732_v51 = vld [vmem:[%s2202_s3 + $0x4c] ss:$16 sps:$4 sm:$0xff]   ;;  %v1727_v52 = vld [vmem:[%s2202_s3 + $0x40] ss:$16 sps:$4 sm:$0xff]  }
  0x46   :  { %1672 = vmatpush3.bf16.msra.mxu0 %v1718_v42  ;;  %876 = vmatpush1.bf16.msra.mxu1 %v1721_v46  ;;  %v1730_v53 = vld [vmem:[%s2202_s3 + $0x48] ss:$16 sps:$4 sm:$0xff]   ;;  %v1735_v54 = vld [vmem:[%s2202_s3 + $0x24] ss:$16 sps:$4 sm:$0xff]   ;;  %v1738_v55 = vld [vmem:[%s2202_s3 + $0x2c] ss:$16 sps:$4 sm:$0xff]  }
  0x47   :  { %1673 = vmatprep.subr.bf16.mxu0 %v1799_v1  ;;  %877 = vmatprep.subr.bf16.mxu1 %v1729_v50  ;;  %v1733_v56 = vld [vmem:[%s2202_s3 + $0x20] ss:$16 sps:$4 sm:$0xff]   ;;  %v1736_v57 = vld [vmem:[%s2202_s3 + $0x28] ss:$16 sps:$4 sm:$0xff]   ;;  %v1741_v58 = vld [vmem:[%s2202_s3 + $0x4] ss:$16 sps:$4 sm:$0xff]  }
  0x48   :  { %v1744_v59 = vld [vmem:[%s2202_s3 + $0xc] ss:$16 sps:$4 sm:$0xff]   ;;  %v1739_v60 = vld [vmem:[%s2202_s3] ss:$16 sps:$4 sm:$0xff]   ;;  %v1742_v61 = vld [vmem:[%s2202_s3 + $0x8] ss:$16 sps:$4 sm:$0xff]  }
  0x49   :  { %v1745_v63 = vld [vmem:[%s2204_s5 + $0x78] sm:$0xff]   ;;  %v1432_v41 = vld [vmem:[%s2201_s2] ss:$0 sm:$0xff]  ;;  %s1777_s18 = scalar_lea.vmem %s1308_s17, 32 }
  0x4a   :  { %1674 = vmatpush3.bf16.msra.mxu0 %v1719_v43  ;;  %878 = vmatpush1.bf16.msra.mxu1 %v1727_v52  ;;  %v1746_v0 = vld [vmem:[%s2204_s5 + $0xf8] sm:$0xff]   ;;  %v1750_v52 = vld [vmem:[%s2204_s5 + $0xf0] sm:$0xff]   ;;  %p1778_p0 = scmp.ne.s32.totalorder %s1308_s17, %s1777_s18  ;;  %p1783_p2 = scmp.lt.s32.totalorder %s1777_s18, %s1777_s18 }
  0x4b   :  { %1675 = vmatprep.subr.bf16.mxu0 %v1799_v1  ;;  %879 = vmatprep.subr.bf16.mxu1 %v1735_v54  ;;  %v1752_v54 = vld [vmem:[%s2204_s5 + $0xb0] sm:$0xff]  }
  0x4c   :  { %p1784_p3 = por %p1783_p2, %p1782_p1 }
  0x4e   :  { %1676 = vmatpush3.bf16.msra.mxu0 %v1720_v44  ;;  %880 = vmatpush1.bf16.msra.mxu1 %v1733_v56  ;;  %v1754_v56 = vld [vmem:[%s2204_s5 + $0xe8] sm:$0xff]   ;;  %p1785_p4 = pnand %p1784_p3, %p1778_p0 }
  0x4f   :  { %916 = vmatprep.subr.bf16.mxu0 %v1726_v49  ;;  %881 = vmatprep.subr.bf16.mxu1 %v1741_v58  ;;  %v1748_v49 = vld [vmem:[%s2204_s5 + $0xb8] sm:$0xff]   ;;  %v1756_v58 = vld [vmem:[%s2204_s5 + $0xa8] sm:$0xff]  }
  0x51   :  { %1678 = vmatmul.mubr.msk.bf16.vlgmr.msra.gmra.mxu0 %vm72_vm1, %v1418_v45 }
  0x52   :  { %917 = vmatpush1.bf16.msra.mxu0 %v1724_v48  ;;  %882 = vmatpush1.bf16.msra.mxu1 %v1739_v60  ;;  %v1747_v48 = vld [vmem:[%s2204_s5 + $0x38] sm:$0xff]   ;;  %v1758_v60 = vld [vmem:[%s2204_s5 + $0xe0] sm:$0xff]  }
  0x53   :  { %918 = vmatprep.subr.bf16.mxu0 %v1732_v51  ;;  %940 = vmatprep.mubr.bf16.mxu0 %v1801_v62  ;;  %v1749_v51 = vld [vmem:[%s2204_s5 + $0x70] sm:$0xff]   ;;  %v1760_v62 = vld [vmem:[%s2204_s5 + $0xa0] sm:$0xff]  }
  0x54   :  { %1529 = vmatprep.subr.bf16.mxu1 %v1745_v63  ;;  %v1761_v63 = vld [vmem:[%s2204_s5 + $0x58] sm:$0xff]  }
  0x56   :  { %919 = vmatpush1.bf16.msra.mxu0 %v1730_v53  ;;  %v1751_v53 = vld [vmem:[%s2204_s5 + $0x30] sm:$0xff]  }
  0x57   :  { %920 = vmatprep.subr.bf16.mxu0 %v1738_v55  ;;  %v1753_v55 = vld [vmem:[%s2204_s5 + $0x68] sm:$0xff]  }
  0x5a   :  { %921 = vmatpush1.bf16.msra.mxu0 %v1736_v57  ;;  %v1755_v57 = vld [vmem:[%s2204_s5 + $0x28] sm:$0xff]  }
  0x5b   :  { %922 = vmatprep.subr.bf16.mxu0 %v1744_v59  ;;  %v1757_v59 = vld [vmem:[%s2204_s5 + $0x60] sm:$0xff]  }
  0x5e   :  { %923 = vmatpush1.bf16.msra.mxu0 %v1742_v61  ;;  %v1759_v61 = vld [vmem:[%s2204_s5 + $0x20] sm:$0xff]  }
  0x5f   :  { %1551 = vmatprep.subr.bf16.mxu0 %v1746_v0  ;;  %v1762_v0 = vld [vmem:[%s2204_s5 + $0xd8] sm:$0xff]  }
  0xd1   :  { %v110_v1 = vpop.f32.mrf.mxu0 }
  0xd2   :  { %v177_v2 = vpop.f32.mrf.mxu1 }
  0xd3   :  { %v1583_v3 = vpop.f32.mrf.mxu0  ;;  %v178_v25 = vadd.f32 %v177_v2, %v110_v1  ;;  %v1763_v1 = vld [vmem:[%s2204_s5 + $0x18] sm:$0xff]  }
  0xd4   :  { %v1595_v4 = vpop.f32.mrf.mxu1  ;;  %v1764_v2 = vld [vmem:[%s2204_s5 + $0x98] sm:$0xff]   ;;  %v1765_v3 = vld [vmem:[%s2204_s5 + $0x50] sm:$0xff]  }
  0xd5   :  { %v113_v5 = vpop.f32.mrf.mxu0  ;;  %v1766_v4 = vld [vmem:[%s2204_s5 + $0xd0] sm:$0xff]  }
  0xd6   :  { %v180_v6 = vpop.f32.mrf.mxu1  ;;  %v1767_v5 = vld [vmem:[%s2204_s5 + $0x10] sm:$0xff]  }
  0xd7   :  { %v1584_v7 = vpop.f32.mrf.mxu0  ;;  %v1768_v6 = vld [vmem:[%s2204_s5 + $0x90] sm:$0xff]  }
  0xd8   :  { %v1596_v8 = vpop.f32.mrf.mxu1  ;;  %v1769_v7 = vld [vmem:[%s2204_s5 + $0x48] sm:$0xff]  }
  0xd9   :  { %v1770_v8 = vld [vmem:[%s2204_s5 + $0xc8] sm:$0xff]  }
  0xe1   :  { %v255_v9 = vpop.f32.mrf.mxu0 }
  0xe2   :  { %v334_v10 = vpop.f32.mrf.mxu1  ;;  %v261_v26 = vadd.f32 %v255_v9, %v178_v25  ;;  %v1771_v9 = vld [vmem:[%s2204_s5 + $0x8] sm:$0xff]  }
  0xe3   :  { %v1607_v11 = vpop.f32.mrf.mxu0 }
  0xe4   :  { %v1619_v12 = vpop.f32.mrf.mxu1  ;;  %v340_v30 = vadd.f32 %v334_v10, %v261_v26  ;;  %v1772_v10 = vld [vmem:[%s2204_s5 + $0x88] sm:$0xff]   ;;  %v1773_v11 = vld [vmem:[%s2204_s5 + $0x40] sm:$0xff]  }
  0xe5   :  { %v258_v13 = vpop.f32.mrf.mxu0  ;;  %v1774_v12 = vld [vmem:[%s2204_s5 + $0xc0] sm:$0xff]  }
  0xe6   :  { %v337_v14 = vpop.f32.mrf.mxu1  ;;  %v1775_v13 = vld [vmem:[%s2204_s5] sm:$0xff]  }
  0xe7   :  { %v1608_v15 = vpop.f32.mrf.mxu0  ;;  %v1776_v14 = vld [vmem:[%s2204_s5 + $0x80] sm:$0xff]  }
  0xe8   :  { %v1620_v16 = vpop.f32.mrf.mxu1  ;;  %v764_v15 = vlaneseq }
  0xea   :  { %v765_v16 = vshrl.u32 %v764_v15, 7 }
  0xf1   :  { %v413_v17 = vpop.f32.mrf.mxu0 }
  0xf2   :  { %v492_v18 = vpop.f32.mrf.mxu1  ;;  %v419_v33 = vadd.f32 %v413_v17, %v340_v30  ;;  %v766_v17 = vsub.s32 0, %v765_v16 }
  0xf3   :  { %v1631_v19 = vpop.f32.mrf.mxu0 }
  0xf4   :  { %v1643_v20 = vpop.f32.mrf.mxu1  ;;  %v498_v37 = vadd.f32 %v492_v18, %v419_v33  ;;  %v774_v18 = vsub.s32 2, %v765_v16  ;;  %v762_v19 = vld [vmem:[%s2203_s4] sm:$0xf] }
  0xf5   :  { %v416_v21 = vpop.f32.mrf.mxu0  ;;  %v770_v20 = vsub.s32 1, %v765_v16 }
  0xf6   :  { %v495_v22 = vpop.f32.mrf.mxu1  ;;  %v778_v21 = vsub.s32 3, %v765_v16 }
  0xf7   :  { %v1632_v23 = vpop.f32.mrf.mxu0  ;;  %v767_v22 = vrot.slane %v762_v19, %v766_v17 }
  0xf8   :  { %v1644_v24 = vpop.f32.mrf.mxu1  ;;  %v775_v23 = vrot.slane %v762_v19, %v774_v18  ;;  %v779_v25 = vrot.slane %v762_v19, %v778_v21 }
  0xf9   :  { %v771_v24 = vrot.slane %v762_v19, %v770_v20 }
 0x101   :  { %v571_v27 = vpop.f32.mrf.mxu0 }
 0x102   :  { %v650_v28 = vpop.f32.mrf.mxu1  ;;  %v577_v38 = vadd.f32 %v571_v27, %v498_v37 }
 0x103   :  { %v1655_v29 = vpop.f32.mrf.mxu0 }
 0x104   :  { %v1667_v31 = vpop.f32.mrf.mxu1  ;;  %v656_v39 = vadd.f32 %v650_v28, %v577_v38 }
 0x105   :  { %v574_v32 = vpop.f32.mrf.mxu0 }
 0x106   :  { %v653_v34 = vpop.f32.mrf.mxu1 }
 0x107   :  { %v1656_v35 = vpop.f32.mrf.mxu0 }
 0x108   :  { %v1668_v36 = vpop.f32.mrf.mxu1 }
 0x111   :  { %v729_v40 = vpop.f32.mrf.mxu0 }
 0x112   :  { %v735_v42 = vadd.f32 %v729_v40, %v656_v39 }
 0x113   :  { %v1679_v43 = vpop.f32.mrf.mxu0 }
 0x114   :  { %v743_v44 = vadd.f32 %v1432_v41, %v735_v42 }
 0x115   :  { %v732_v45 = vpop.f32.mrf.mxu0 }
 0x116   :  { %v744_v46 = vmax.f32 %v743_v44, 0.0 }
 0x117   :  { %v1680_v47 = vpop.f32.mrf.mxu0 }
 0x118   :  { %v745_v50 = vpack.c.bf16 %v744_v46, %v744_v46 }
 0x11a   :  { %1449 = vmatmul.mubr.msk.bf16.vlgmr.msra.gmra.mxu1 %vm72_vm1, %v745_v50  ;;  %1450 = vmatmul.mubr.msk.bf16.vlgmr.msra.gmra.mxu0 %vm72_vm1, %v745_v50 }
 0x11b   :  { %1530 = vmatpush3.bf16.msra.mxu1 %v1747_v48  ;;  %1552 = vmatpush3.bf16.msra.mxu0 %v1748_v49  ;;  %v1451_v48 = vld [vmem:[%s2205_s6] ss:$0 sm:$0xff] }
 0x11c   :  { %1531 = vmatprep.subr.bf16.mxu1 %v1749_v51  ;;  %1553 = vmatprep.subr.bf16.mxu0 %v1750_v52 }
 0x11f   :  { %1532 = vmatpush3.bf16.msra.mxu1 %v1751_v53  ;;  %1554 = vmatpush3.bf16.msra.mxu0 %v1752_v54 }
 0x120   :  { %1533 = vmatprep.subr.bf16.mxu1 %v1753_v55  ;;  %1555 = vmatprep.subr.bf16.mxu0 %v1754_v56 }
 0x123   :  { %1534 = vmatpush3.bf16.msra.mxu1 %v1755_v57  ;;  %1556 = vmatpush3.bf16.msra.mxu0 %v1756_v58 }
 0x124   :  { %1535 = vmatprep.subr.bf16.mxu1 %v1757_v59  ;;  %1557 = vmatprep.subr.bf16.mxu0 %v1758_v60 }
 0x127   :  { %1536 = vmatpush3.bf16.msra.mxu1 %v1759_v61  ;;  %1558 = vmatpush3.bf16.msra.mxu0 %v1760_v62 }
 0x128   :  { %1537 = vmatprep.subr.bf16.mxu1 %v1761_v63  ;;  %1559 = vmatprep.subr.bf16.mxu0 %v1762_v0 }
 0x12b   :  { %1538 = vmatpush3.bf16.msra.mxu1 %v1763_v1  ;;  %1560 = vmatpush3.bf16.msra.mxu0 %v1764_v2 }
 0x12c   :  { %1539 = vmatprep.subr.bf16.mxu1 %v1765_v3  ;;  %1561 = vmatprep.subr.bf16.mxu0 %v1766_v4 }
 0x12f   :  { %1540 = vmatpush3.bf16.msra.mxu1 %v1767_v5  ;;  %1562 = vmatpush3.bf16.msra.mxu0 %v1768_v6 }
 0x130   :  { %1541 = vmatprep.subr.bf16.mxu1 %v1769_v7  ;;  %1563 = vmatprep.subr.bf16.mxu0 %v1770_v8 }
 0x133   :  { %1542 = vmatpush3.bf16.msra.mxu1 %v1771_v9  ;;  %1564 = vmatpush3.bf16.msra.mxu0 %v1772_v10 }
 0x134   :  { %1543 = vmatprep.subr.bf16.mxu1 %v1773_v11  ;;  %1565 = vmatprep.subr.bf16.mxu0 %v1774_v12 }
 0x137   :  { %1544 = vmatpush3.bf16.msra.mxu1 %v1775_v13  ;;  %1566 = vmatpush3.bf16.msra.mxu0 %v1776_v14 }
 0x1da   :  { %v901_v26 = vpop.f32.mrf.mxu1  ;;  %v942_v27 = vpop.f32.mrf.mxu0 }
 0x1db   :  { %v902_v28 = vadd.f32 %v901_v26, %v767_v22  ;;  %v943_v29 = vadd.f32 %v942_v27, %v775_v23 }
 0x1dc   :  { %v903_v30 = vpop.f32.mrf.mxu1  ;;  %v944_v31 = vpop.f32.mrf.mxu0 }
 0x1dd   :  { %v904_v32 = vadd.f32 %v903_v30, %v771_v24  ;;  %v945_v33 = vadd.f32 %v944_v31, %v779_v25  ;;  %v949_v34 = vmax.f32 %v902_v28, 0.0  ;;  %v951_v35 = vmax.f32 %v943_v29, 0.0 }
 0x1de   :  { %v905_v36 = vpop.f32.mrf.mxu1  ;;  %v946_v37 = vpop.f32.mrf.mxu0 }
 0x1df   :  { %v950_v38 = vmax.f32 %v904_v32, 0.0  ;;  %v952_v39 = vmax.f32 %v945_v33, 0.0  ;;  %v953_v44 = vpack.c.bf16 %v949_v34, %v949_v34  ;;  %v955_v45 = vpack.c.bf16 %v951_v35, %v951_v35 }
 0x1e0   :  { %v906_v40 = vpop.f32.mrf.mxu1  ;;  %v947_v41 = vpop.f32.mrf.mxu0 }
 0x1e1   :  { %v954_v42 = vpack.c.bf16 %v950_v38, %v950_v38  ;;  %v956_v43 = vpack.c.bf16 %v952_v39, %v952_v39 }
 0x1e3   :  { %1252 = vmatprep.mubr.bf16.mxu1 %v954_v42  ;;  %1292 = vmatprep.mubr.bf16.mxu0 %v956_v43 }
 0x1e4   :  { %1253 = vmatmul.mubr.bf16.vlgmr.msra.gmra.mxu1 %v953_v44  ;;  %1293 = vmatmul.mubr.bf16.vlgmr.msra.gmra.mxu0 %v955_v45 }
 0x2a4   :  { %v1545_v46 = vpop.f32.mrf.mxu1  ;;  %v1567_v47 = vpop.f32.mrf.mxu0 }
 0x2a6   :  { %v1546_v49 = vpop.f32.mrf.mxu1  ;;  %v1568_v50 = vpop.f32.mrf.mxu0 }
 0x2a7   :  { %v1547_v51 = vadd.f32 %v1546_v49, %v1545_v46  ;;  %v1569_v55 = vadd.f32 %v1568_v50, %v1567_v47 }
 0x2a8   :  { %v1548_v52 = vpop.f32.mrf.mxu1  ;;  %v1570_v53 = vpop.f32.mrf.mxu0 }
 0x2a9   :  { %v1255_v54 = vadd.f32 %v1547_v51, %v1451_v48 }
 0x2aa   :  { %v1549_v56 = vpop.f32.mrf.mxu1  ;;  %v1571_v57 = vpop.f32.mrf.mxu0 }
 0x2ab   :  { %v1295_v58 = vadd.f32 %v1569_v55, %v1255_v54 }
 0x2ad   :  { %1300 = vst [vmem:[#allocation2] sm:$0x3] %v1295_v58 }
 0x2ae   :  { %1788 = shalt.err (!%p1785_p4)
}
 0x2af   :  { %1310 = dma.vmem_to_hbm [thread:$0]  %s1308_s17, 32, %s2206_s7, [#allocation3]  }
 0x2b0   :  { %1797 = dma.done.wait [#allocation3], 32  }
 0x2b1   :  { %1798 = vsyncadd [#allocation3], 4294967264 }
 0x2b2   :  { %1314 = vsyncpa [#allocation3], 1 }

</bundles_post_ra>
